<compile_context>
chip_gen: v5e
topology: v5e:2x2
jax: 0.10.0
libtpu: 0.0.40
codegen_flags: <defaults>
</compile_context>

<pallas_src>
import jax
import jax.numpy as jnp
import numpy as np
from jax.experimental import pallas as pl
from jax.experimental.pallas import tpu as pltpu


# ---------------------------------------------------------------------------
# Host-side parameter packing (done once, outside jit).
# ---------------------------------------------------------------------------
def _banded_conv3x3(w, W):
    """Pack a (3,3,Cin,Cout) conv weight into 3 banded matrices (one per dy).

    B[dy] has shape (W*Cin, W*Cout) and maps one row slab of the
    width-flattened input (lanes ordered (w, cin)) to the width-flattened
    output row (lanes ordered (w, cout)).  The 'same'-padding along W is
    folded into the band structure (out-of-range taps are simply absent).
    """
    _, _, Cin, Cout = w.shape
    B = np.zeros((3, W * Cin, W * Cout), np.float32)
    for dy in range(3):
        for wo in range(W):
            for dx in range(3):
                wi = wo + dx - 1
                if 0 <= wi < W:
                    B[dy, wi * Cin:(wi + 1) * Cin,
                      wo * Cout:(wo + 1) * Cout] = w[dy, dx]
    return B


def pack_cab_params(params, H, W):
    """Pre-pack CAB weights for the fused kernel (pure numpy, outside jit)."""
    w1, b1, w2, b2, wc1, bc1, wc2, bc2 = [np.asarray(p, np.float32) for p in params]
    Cmid = w1.shape[3]
    Cg = Cmid // 2

    # conv1 split into the two SimpleGate halves so the gate is a plain
    # lane-aligned elementwise multiply of two matmul outputs.
    B1a = _banded_conv3x3(w1[..., :Cg], W)          # (3, W*Cin, W*Cg)
    B1b = _banded_conv3x3(w1[..., Cg:], W)          # (3, W*Cin, W*Cg)
    B2 = _banded_conv3x3(w2, W)                     # (3, W*Cg,  W*C)

    b1a = np.tile(b1[:, :Cg], (1, W))               # (1, W*Cg)
    b1b = np.tile(b1[:, Cg:], (1, W))               # (1, W*Cg)
    b2t = np.tile(b2, (1, W))                       # (1, W*C)

    # Channel attention 1x1 convs with the global-mean scale and the
    # per-channel -> per-(w,c)-lane broadcast folded in.
    wc1f = np.tile(wc1, (W, 1)) / float(H * W)      # (W*C, Csq)
    wc2f = np.tile(wc2, (1, W))                     # (Csq//2, W*C)
    bc2f = np.tile(bc2, (1, W))                     # (1, W*C)

    return tuple(jnp.asarray(a) for a in
                 (B1a, B1b, b1a, b1b, B2, b2t, wc1f, bc1, wc2f, bc2f))


# ---------------------------------------------------------------------------
# Fused CAB kernel (one image per grid step).
# ---------------------------------------------------------------------------
def cab_kernel(x_ref, w1a_ref, w1b_ref, b1a_ref, b1b_ref,
               w2_ref, b2_ref, wc1_ref, bc1_ref, wc2_ref, bc2_ref, o_ref):
    H, WCin = x_ref.shape                      # width-flattened input (H, W*Cin)
    WCg = w1a_ref.shape[2]                     # W * Cg
    WC = w2_ref.shape[2]                       # W * C

    # One zero row top/bottom (width padding already lives in the banded weights).
    zx = jnp.zeros((1, WCin), jnp.float32)
    xp = jnp.concatenate([zx, x_ref[...], zx], axis=0)           # (H+2, W*Cin)

    # --- conv1 (3x3, pad=1): 3 row-slab matmuls per gate half, K = W*Cin ---
    ya = jnp.broadcast_to(b1a_ref[...], (H, WCg))                # bias in the init
    yb = jnp.broadcast_to(b1b_ref[...], (H, WCg))
    for dy in range(3):                                          # static unroll
        slab = xp[dy:dy + H, :]                                  # contiguous rows
        ya = ya + jnp.dot(slab, w1a_ref[dy], preferred_element_type=jnp.float32)
        yb = yb + jnp.dot(slab, w1b_ref[dy], preferred_element_type=jnp.float32)
    g = ya * yb                                                  # SimpleGate, (H, W*Cg)

    # --- conv2 (3x3, pad=1): output natively lane-dense (H, W*C) ---
    zgpad = jnp.zeros((1, WCg), jnp.float32)
    gp = jnp.concatenate([zgpad, g, zgpad], axis=0)              # (H+2, W*Cg)
    y2 = jnp.broadcast_to(b2_ref[...], (H, WC))
    for dy in range(3):
        y2 = y2 + jnp.dot(gp[dy:dy + H, :], w2_ref[dy],
                          preferred_element_type=jnp.float32)

    # --- ChannelAttention: avg-pool -> 1x1 -> SimpleGate -> 1x1 -> sigmoid ---
    # Cross-sublane sum (XLU) for the pool; the 1/(H*W) scale and the
    # channel->lane broadcast are already folded into wc1f / wc2f / bc2f.
    rowsum = jnp.sum(y2, axis=0, keepdims=True)                           # (1, W*C)
    z = jnp.dot(rowsum, wc1_ref[...],
                preferred_element_type=jnp.float32) + bc1_ref[...]        # (1, Csq)
    half = z.shape[1] // 2
    zgate = z[:, :half] * z[:, half:]                                     # SimpleGate
    att = jnp.dot(zgate, wc2_ref[...],
                  preferred_element_type=jnp.float32) + bc2_ref[...]      # (1, W*C)
    scale = jax.nn.sigmoid(att)

    o_ref[...] = (y2 * scale).astype(o_ref.dtype)                # lane-dense store


# ---------------------------------------------------------------------------
# Wrapper.
# ---------------------------------------------------------------------------
def cab_forward(x_nchw, packed):
    """Fused CAB forward. x_nchw: (N, C, H, W) f32 -> (N, C, H, W) f32."""
    B1a, B1b, b1a, b1b, B2, b2t, wc1f, bc1, wc2f, bc2f = packed
    N, C, H, W = x_nchw.shape
    WC = W * C

    # NCHW -> NHWC -> width-flattened (free reshape): lanes hold (w, c) jointly.
    x = jnp.transpose(x_nchw, (0, 2, 3, 1)).reshape(N, H, WC)

    out_flat = pl.pallas_call(
        cab_kernel,
        out_shape=jax.ShapeDtypeStruct((N, H, WC), jnp.float32),
        grid=(N,),
        in_specs=[
            pl.BlockSpec((None, H, WC), lambda n: (n, 0, 0)),    # per-image input
            pl.BlockSpec(B1a.shape, lambda n: (0, 0, 0)),        # conv1 gate half a
            pl.BlockSpec(B1b.shape, lambda n: (0, 0, 0)),        # conv1 gate half b
            pl.BlockSpec(b1a.shape, lambda n: (0, 0)),
            pl.BlockSpec(b1b.shape, lambda n: (0, 0)),
            pl.BlockSpec(B2.shape, lambda n: (0, 0, 0)),         # conv2
            pl.BlockSpec(b2t.shape, lambda n: (0, 0)),
            pl.BlockSpec(wc1f.shape, lambda n: (0, 0)),          # CA squeeze (pool folded)
            pl.BlockSpec(bc1.shape, lambda n: (0, 0)),
            pl.BlockSpec(wc2f.shape, lambda n: (0, 0)),          # CA excite (bcast folded)
            pl.BlockSpec(bc2f.shape, lambda n: (0, 0)),
        ],
        out_specs=pl.BlockSpec((None, H, WC), lambda n: (n, 0, 0)),
        compiler_params=pltpu.CompilerParams(
            dimension_semantics=("parallel",)),
    )(x, B1a, B1b, b1a, b1b, B2, b2t, wc1f, bc1, wc2f, bc2f)

    out = out_flat.reshape(N, H, W, C)
    return jnp.transpose(out, (0, 3, 1, 2))                      # NHWC -> NCHW


# ---------------------------------------------------------------------------
# Pure-JAX reference (mirrors the PyTorch forward) and parameter construction.
# ---------------------------------------------------------------------------
def cab_reference(x_nchw, params):
    w1, b1, w2, b2, wc1, bc1, wc2, bc2 = params
    x = jnp.transpose(x_nchw, (0, 2, 3, 1))

    def conv3(x, w, b):
        y = jax.lax.conv_general_dilated(
            x, w, (1, 1), "SAME", dimension_numbers=("NHWC", "HWIO", "NHWC"))
        return y + b.reshape(1, 1, 1, -1)

    y = conv3(x, w1, b1)
    c = y.shape[-1] // 2
    g = y[..., :c] * y[..., c:]                                  # SimpleGate
    y2 = conv3(g, w2, b2)
    pooled = jnp.mean(y2, axis=(1, 2))
    z = pooled @ wc1 + bc1.reshape(1, -1)
    h = z.shape[-1] // 2
    zg = z[:, :h] * z[:, h:]                                     # SimpleGate
    s = jax.nn.sigmoid(zg @ wc2 + bc2.reshape(1, -1))
    out = y2 * s[:, None, None, :]
    return jnp.transpose(out, (0, 3, 1, 2))


def make_params(key, num_feat=16, compress_ratio=2, squeeze_factor=4):
    Cmid = num_feat // compress_ratio        # conv1 out channels
    Cg = Cmid // 2                           # after SimpleGate
    Csq = num_feat // squeeze_factor         # CA hidden
    Csq2 = Csq // 2                          # CA hidden after SimpleGate
    ks = jax.random.split(key, 8)
    sc = 0.1
    w1 = sc * jax.random.normal(ks[0], (3, 3, num_feat, Cmid), jnp.float32)
    b1 = sc * jax.random.normal(ks[1], (1, Cmid), jnp.float32)
    w2 = sc * jax.random.normal(ks[2], (3, 3, Cg, num_feat), jnp.float32)
    b2 = sc * jax.random.normal(ks[3], (1, num_feat), jnp.float32)
    wc1 = sc * jax.random.normal(ks[4], (num_feat, Csq), jnp.float32)
    bc1 = sc * jax.random.normal(ks[5], (1, Csq), jnp.float32)
    wc2 = sc * jax.random.normal(ks[6], (Csq2, num_feat), jnp.float32)
    bc2 = sc * jax.random.normal(ks[7], (1, num_feat), jnp.float32)
    return (w1, b1, w2, b2, wc1, bc1, wc2, bc2)


if __name__ == "__main__":
    num_feat, N, H, W = 16, 2, 16, 16   # num_feat must be divisible by 8
    key = jax.random.PRNGKey(0)
    kp, kx = jax.random.split(key)
    params = make_params(kp, num_feat=num_feat)
    x = jax.random.normal(kx, (N, num_feat, H, W), jnp.float32)

    packed = pack_cab_params(params, H, W)          # one-time host-side packing
    fwd = jax.jit(cab_forward)
    out = jax.block_until_ready(fwd(x, packed))

    ref = jax.block_until_ready(cab_reference(x, params))
    assert out.shape == (N, num_feat, H, W)
    np.testing.assert_allclose(np.asarray(out), np.asarray(ref), rtol=1e-3, atol=1e-3)

    print("KERNEL_OK")
</pallas_src>

<mosaic_0001>
module attributes {stable_mosaic.version = 11 : i64} {
  func.func @cab_kernel(%arg0: i32, %arg1: memref<1x16x256xf32, #tpu.memory_space<vmem>>, %arg2: memref<3x256x64xf32, #tpu.memory_space<vmem>>, %arg3: memref<3x256x64xf32, #tpu.memory_space<vmem>>, %arg4: memref<1x64xf32, #tpu.memory_space<vmem>>, %arg5: memref<1x64xf32, #tpu.memory_space<vmem>>, %arg6: memref<3x64x256xf32, #tpu.memory_space<vmem>>, %arg7: memref<1x256xf32, #tpu.memory_space<vmem>>, %arg8: memref<256x4xf32, #tpu.memory_space<vmem>>, %arg9: memref<1x4xf32, #tpu.memory_space<vmem>>, %arg10: memref<2x256xf32, #tpu.memory_space<vmem>>, %arg11: memref<1x256xf32, #tpu.memory_space<vmem>>, %arg12: memref<1x16x256xf32, #tpu.memory_space<vmem>>) attributes {dimension_semantics = [#tpu.dimension_semantics<parallel>], iteration_bounds = array<i64: 2>, scalar_prefetch = 0 : i64, scratch_operands = 0 : i64, tpu.core_type = #tpu.core_type<tc>, window_params = [{transform_indices = @transform_0, window_bounds = array<i64: 1, 16, 256>}, {pipeline_mode = #tpu.pipeline_mode<synchronous>, transform_indices = @transform_1, window_bounds = array<i64: 3, 256, 64>}, {pipeline_mode = #tpu.pipeline_mode<synchronous>, transform_indices = @transform_2, window_bounds = array<i64: 3, 256, 64>}, {pipeline_mode = #tpu.pipeline_mode<synchronous>, transform_indices = @transform_3, window_bounds = array<i64: 1, 64>}, {pipeline_mode = #tpu.pipeline_mode<synchronous>, transform_indices = @transform_4, window_bounds = array<i64: 1, 64>}, {pipeline_mode = #tpu.pipeline_mode<synchronous>, transform_indices = @transform_5, window_bounds = array<i64: 3, 64, 256>}, {pipeline_mode = #tpu.pipeline_mode<synchronous>, transform_indices = @transform_6, window_bounds = array<i64: 1, 256>}, {pipeline_mode = #tpu.pipeline_mode<synchronous>, transform_indices = @transform_7, window_bounds = array<i64: 256, 4>}, {pipeline_mode = #tpu.pipeline_mode<synchronous>, transform_indices = @transform_8, window_bounds = array<i64: 1, 4>}, {pipeline_mode = #tpu.pipeline_mode<synchronous>, transform_indices = @transform_9, window_bounds = array<i64: 2, 256>}, {pipeline_mode = #tpu.pipeline_mode<synchronous>, transform_indices = @transform_10, window_bounds = array<i64: 1, 256>}, {transform_indices = @transform_11, window_bounds = array<i64: 1, 16, 256>}]} {
    %cst = arith.constant 0.000000e+00 : f32
    %0 = vector.broadcast %cst : f32 to vector<1x256xf32>
    %c0 = arith.constant 0 : index
    %c0_0 = arith.constant 0 : index
    %c0_1 = arith.constant 0 : index
    %1 = vector.load %arg1[%c0, %c0_0, %c0_1] : memref<1x16x256xf32, #tpu.memory_space<vmem>>, vector<1x16x256xf32>
    %2 = vector.shape_cast %1 : vector<1x16x256xf32> to vector<16x256xf32>
    %3 = tpu.concatenate %0, %2, %0 in 0 : vector<1x256xf32>, vector<16x256xf32>, vector<1x256xf32> -> vector<18x256xf32>
    %c0_2 = arith.constant 0 : index
    %c0_3 = arith.constant 0 : index
    %4 = vector.load %arg4[%c0_2, %c0_3] : memref<1x64xf32, #tpu.memory_space<vmem>>, vector<1x64xf32>
    %5 = vector.shape_cast %4 : vector<1x64xf32> to vector<1x64xf32>
    %6 = vector.broadcast %5 : vector<1x64xf32> to vector<16x64xf32>
    %c0_4 = arith.constant 0 : index
    %c0_5 = arith.constant 0 : index
    %7 = vector.load %arg5[%c0_4, %c0_5] : memref<1x64xf32, #tpu.memory_space<vmem>>, vector<1x64xf32>
    %8 = vector.shape_cast %7 : vector<1x64xf32> to vector<1x64xf32>
    %9 = vector.broadcast %8 : vector<1x64xf32> to vector<16x64xf32>
    %10 = vector.extract_strided_slice %3 {offsets = [0, 0], sizes = [16, 256], strides = [1, 1]} : vector<18x256xf32> to vector<16x256xf32>
    %c0_6 = arith.constant 0 : index
    %c0_7 = arith.constant 0 : index
    %c0_8 = arith.constant 0 : index
    %11 = vector.load %arg2[%c0_6, %c0_7, %c0_8] : memref<3x256x64xf32, #tpu.memory_space<vmem>>, vector<1x256x64xf32>
    %12 = vector.shape_cast %11 : vector<1x256x64xf32> to vector<256x64xf32>
    %cst_9 = arith.constant dense<0.000000e+00> : vector<16x64xf32>
    %13 = tpu.matmul %10, %12, %cst_9 {dimension_numbers = #tpu.dot_dimension_numbers<[1], [0], [0], [1], [0, 0, 1, 1], [], []>} : vector<16x256xf32>, vector<256x64xf32>, vector<16x64xf32> -> vector<16x64xf32>
    %14 = arith.addf %6, %13 : vector<16x64xf32>
    %c0_10 = arith.constant 0 : index
    %c0_11 = arith.constant 0 : index
    %c0_12 = arith.constant 0 : index
    %15 = vector.load %arg3[%c0_10, %c0_11, %c0_12] : memref<3x256x64xf32, #tpu.memory_space<vmem>>, vector<1x256x64xf32>
    %16 = vector.shape_cast %15 : vector<1x256x64xf32> to vector<256x64xf32>
    %cst_13 = arith.constant dense<0.000000e+00> : vector<16x64xf32>
    %17 = tpu.matmul %10, %16, %cst_13 {dimension_numbers = #tpu.dot_dimension_numbers<[1], [0], [0], [1], [0, 0, 1, 1], [], []>} : vector<16x256xf32>, vector<256x64xf32>, vector<16x64xf32> -> vector<16x64xf32>
    %18 = arith.addf %9, %17 : vector<16x64xf32>
    %19 = vector.extract_strided_slice %3 {offsets = [1, 0], sizes = [16, 256], strides = [1, 1]} : vector<18x256xf32> to vector<16x256xf32>
    %c1 = arith.constant 1 : index
    %c0_14 = arith.constant 0 : index
    %c0_15 = arith.constant 0 : index
    %20 = vector.load %arg2[%c1, %c0_14, %c0_15] : memref<3x256x64xf32, #tpu.memory_space<vmem>>, vector<1x256x64xf32>
    %21 = vector.shape_cast %20 : vector<1x256x64xf32> to vector<256x64xf32>
    %cst_16 = arith.constant dense<0.000000e+00> : vector<16x64xf32>
    %22 = tpu.matmul %19, %21, %cst_16 {dimension_numbers = #tpu.dot_dimension_numbers<[1], [0], [0], [1], [0, 0, 1, 1], [], []>} : vector<16x256xf32>, vector<256x64xf32>, vector<16x64xf32> -> vector<16x64xf32>
    %23 = arith.addf %14, %22 : vector<16x64xf32>
    %c1_17 = arith.constant 1 : index
    %c0_18 = arith.constant 0 : index
    %c0_19 = arith.constant 0 : index
    %24 = vector.load %arg3[%c1_17, %c0_18, %c0_19] : memref<3x256x64xf32, #tpu.memory_space<vmem>>, vector<1x256x64xf32>
    %25 = vector.shape_cast %24 : vector<1x256x64xf32> to vector<256x64xf32>
    %cst_20 = arith.constant dense<0.000000e+00> : vector<16x64xf32>
    %26 = tpu.matmul %19, %25, %cst_20 {dimension_numbers = #tpu.dot_dimension_numbers<[1], [0], [0], [1], [0, 0, 1, 1], [], []>} : vector<16x256xf32>, vector<256x64xf32>, vector<16x64xf32> -> vector<16x64xf32>
    %27 = arith.addf %18, %26 : vector<16x64xf32>
    %28 = vector.extract_strided_slice %3 {offsets = [2, 0], sizes = [16, 256], strides = [1, 1]} : vector<18x256xf32> to vector<16x256xf32>
    %c2 = arith.constant 2 : index
    %c0_21 = arith.constant 0 : index
    %c0_22 = arith.constant 0 : index
    %29 = vector.load %arg2[%c2, %c0_21, %c0_22] : memref<3x256x64xf32, #tpu.memory_space<vmem>>, vector<1x256x64xf32>
    %30 = vector.shape_cast %29 : vector<1x256x64xf32> to vector<256x64xf32>
    %cst_23 = arith.constant dense<0.000000e+00> : vector<16x64xf32>
    %31 = tpu.matmul %28, %30, %cst_23 {dimension_numbers = #tpu.dot_dimension_numbers<[1], [0], [0], [1], [0, 0, 1, 1], [], []>} : vector<16x256xf32>, vector<256x64xf32>, vector<16x64xf32> -> vector<16x64xf32>
    %32 = arith.addf %23, %31 : vector<16x64xf32>
    %c2_24 = arith.constant 2 : index
    %c0_25 = arith.constant 0 : index
    %c0_26 = arith.constant 0 : index
    %33 = vector.load %arg3[%c2_24, %c0_25, %c0_26] : memref<3x256x64xf32, #tpu.memory_space<vmem>>, vector<1x256x64xf32>
    %34 = vector.shape_cast %33 : vector<1x256x64xf32> to vector<256x64xf32>
    %cst_27 = arith.constant dense<0.000000e+00> : vector<16x64xf32>
    %35 = tpu.matmul %28, %34, %cst_27 {dimension_numbers = #tpu.dot_dimension_numbers<[1], [0], [0], [1], [0, 0, 1, 1], [], []>} : vector<16x256xf32>, vector<256x64xf32>, vector<16x64xf32> -> vector<16x64xf32>
    %36 = arith.addf %27, %35 : vector<16x64xf32>
    %37 = arith.mulf %32, %36 : vector<16x64xf32>
    %cst_28 = arith.constant 0.000000e+00 : f32
    %38 = vector.broadcast %cst_28 : f32 to vector<1x64xf32>
    %39 = tpu.concatenate %38, %37, %38 in 0 : vector<1x64xf32>, vector<16x64xf32>, vector<1x64xf32> -> vector<18x64xf32>
    %c0_29 = arith.constant 0 : index
    %c0_30 = arith.constant 0 : index
    %40 = vector.load %arg7[%c0_29, %c0_30] : memref<1x256xf32, #tpu.memory_space<vmem>>, vector<1x256xf32>
    %41 = vector.shape_cast %40 : vector<1x256xf32> to vector<1x256xf32>
    %42 = vector.broadcast %41 : vector<1x256xf32> to vector<16x256xf32>
    %43 = vector.extract_strided_slice %39 {offsets = [0, 0], sizes = [16, 64], strides = [1, 1]} : vector<18x64xf32> to vector<16x64xf32>
    %c0_31 = arith.constant 0 : index
    %c0_32 = arith.constant 0 : index
    %c0_33 = arith.constant 0 : index
    %44 = vector.load %arg6[%c0_31, %c0_32, %c0_33] : memref<3x64x256xf32, #tpu.memory_space<vmem>>, vector<1x64x256xf32>
    %45 = vector.shape_cast %44 : vector<1x64x256xf32> to vector<64x256xf32>
    %cst_34 = arith.constant dense<0.000000e+00> : vector<16x256xf32>
    %46 = tpu.matmul %43, %45, %cst_34 {dimension_numbers = #tpu.dot_dimension_numbers<[1], [0], [0], [1], [0, 0, 1, 1], [], []>} : vector<16x64xf32>, vector<64x256xf32>, vector<16x256xf32> -> vector<16x256xf32>
    %47 = arith.addf %42, %46 : vector<16x256xf32>
    %48 = vector.extract_strided_slice %39 {offsets = [1, 0], sizes = [16, 64], strides = [1, 1]} : vector<18x64xf32> to vector<16x64xf32>
    %c1_35 = arith.constant 1 : index
    %c0_36 = arith.constant 0 : index
    %c0_37 = arith.constant 0 : index
    %49 = vector.load %arg6[%c1_35, %c0_36, %c0_37] : memref<3x64x256xf32, #tpu.memory_space<vmem>>, vector<1x64x256xf32>
    %50 = vector.shape_cast %49 : vector<1x64x256xf32> to vector<64x256xf32>
    %cst_38 = arith.constant dense<0.000000e+00> : vector<16x256xf32>
    %51 = tpu.matmul %48, %50, %cst_38 {dimension_numbers = #tpu.dot_dimension_numbers<[1], [0], [0], [1], [0, 0, 1, 1], [], []>} : vector<16x64xf32>, vector<64x256xf32>, vector<16x256xf32> -> vector<16x256xf32>
    %52 = arith.addf %47, %51 : vector<16x256xf32>
    %53 = vector.extract_strided_slice %39 {offsets = [2, 0], sizes = [16, 64], strides = [1, 1]} : vector<18x64xf32> to vector<16x64xf32>
    %c2_39 = arith.constant 2 : index
    %c0_40 = arith.constant 0 : index
    %c0_41 = arith.constant 0 : index
    %54 = vector.load %arg6[%c2_39, %c0_40, %c0_41] : memref<3x64x256xf32, #tpu.memory_space<vmem>>, vector<1x64x256xf32>
    %55 = vector.shape_cast %54 : vector<1x64x256xf32> to vector<64x256xf32>
    %cst_42 = arith.constant dense<0.000000e+00> : vector<16x256xf32>
    %56 = tpu.matmul %53, %55, %cst_42 {dimension_numbers = #tpu.dot_dimension_numbers<[1], [0], [0], [1], [0, 0, 1, 1], [], []>} : vector<16x64xf32>, vector<64x256xf32>, vector<16x256xf32> -> vector<16x256xf32>
    %57 = arith.addf %52, %56 : vector<16x256xf32>
    %cst_43 = arith.constant dense<0.000000e+00> : vector<256xf32>
    %58 = vector.multi_reduction <add>, %57, %cst_43 [0] : vector<16x256xf32> to vector<256xf32>
    %59 = vector.shape_cast %58 : vector<256xf32> to vector<1x256xf32>
    %c0_44 = arith.constant 0 : index
    %c0_45 = arith.constant 0 : index
    %60 = vector.load %arg8[%c0_44, %c0_45] : memref<256x4xf32, #tpu.memory_space<vmem>>, vector<256x4xf32>
    %cst_46 = arith.constant dense<0.000000e+00> : vector<1x4xf32>
    %61 = tpu.matmul %59, %60, %cst_46 {dimension_numbers = #tpu.dot_dimension_numbers<[1], [0], [0], [1], [0, 0, 1, 1], [], []>} : vector<1x256xf32>, vector<256x4xf32>, vector<1x4xf32> -> vector<1x4xf32>
    %c0_47 = arith.constant 0 : index
    %c0_48 = arith.constant 0 : index
    %62 = vector.load %arg9[%c0_47, %c0_48] : memref<1x4xf32, #tpu.memory_space<vmem>>, vector<1x4xf32>
    %63 = arith.addf %61, %62 : vector<1x4xf32>
    %64 = vector.extract_strided_slice %63 {offsets = [0, 0], sizes = [1, 2], strides = [1, 1]} : vector<1x4xf32> to vector<1x2xf32>
    %65 = vector.extract_strided_slice %63 {offsets = [0, 2], sizes = [1, 2], strides = [1, 1]} : vector<1x4xf32> to vector<1x2xf32>
    %66 = arith.mulf %64, %65 : vector<1x2xf32>
    %c0_49 = arith.constant 0 : index
    %c0_50 = arith.constant 0 : index
    %67 = vector.load %arg10[%c0_49, %c0_50] : memref<2x256xf32, #tpu.memory_space<vmem>>, vector<2x256xf32>
    %cst_51 = arith.constant dense<0.000000e+00> : vector<1x256xf32>
    %68 = tpu.matmul %66, %67, %cst_51 {dimension_numbers = #tpu.dot_dimension_numbers<[1], [0], [0], [1], [0, 0, 1, 1], [], []>} : vector<1x2xf32>, vector<2x256xf32>, vector<1x256xf32> -> vector<1x256xf32>
    %c0_52 = arith.constant 0 : index
    %c0_53 = arith.constant 0 : index
    %69 = vector.load %arg11[%c0_52, %c0_53] : memref<1x256xf32, #tpu.memory_space<vmem>>, vector<1x256xf32>
    %70 = arith.addf %68, %69 : vector<1x256xf32>
    %71 = arith.negf %70 : vector<1x256xf32>
    %72 = math.exp %71 : vector<1x256xf32>
    %cst_54 = arith.constant 1.000000e+00 : f32
    %73 = vector.broadcast %cst_54 : f32 to vector<1x256xf32>
    %74 = arith.addf %73, %72 : vector<1x256xf32>
    %75 = arith.divf %73, %74 : vector<1x256xf32>
    %76 = vector.broadcast %75 : vector<1x256xf32> to vector<16x256xf32>
    %77 = arith.mulf %57, %76 : vector<16x256xf32>
    %c0_55 = arith.constant 0 : index
    %c0_56 = arith.constant 0 : index
    %c0_57 = arith.constant 0 : index
    %78 = vector.load %arg12[%c0_55, %c0_56, %c0_57] : memref<1x16x256xf32, #tpu.memory_space<vmem>>, vector<1x16x256xf32>
    %79 = vector.shape_cast %78 : vector<1x16x256xf32> to vector<16x256xf32>
    %80 = vector.shape_cast %77 : vector<16x256xf32> to vector<1x16x256xf32>
    tpu.vector_store %arg12[%c0_55, %c0_56, %c0_57], %80 {strides = array<i32>} : memref<1x16x256xf32, #tpu.memory_space<vmem>>, vector<1x16x256xf32>,
    return
  }
  func.func @transform_0(%arg0: i32) -> (i32, i32, i32) {
    %c0_i32 = arith.constant 0 : i32
    %c0_i32_0 = arith.constant 0 : i32
    %c0_i32_1 = arith.constant 0 : i32
    return %arg0, %c0_i32, %c0_i32_0 : i32, i32, i32
  }
  func.func @transform_1(%arg0: i32) -> (i32, i32, i32) {
    %c0_i32 = arith.constant 0 : i32
    %c0_i32_0 = arith.constant 0 : i32
    %c0_i32_1 = arith.constant 0 : i32
    %c0_i32_2 = arith.constant 0 : i32
    return %c0_i32, %c0_i32_0, %c0_i32_1 : i32, i32, i32
  }
  func.func @transform_2(%arg0: i32) -> (i32, i32, i32) {
    %c0_i32 = arith.constant 0 : i32
    %c0_i32_0 = arith.constant 0 : i32
    %c0_i32_1 = arith.constant 0 : i32
    %c0_i32_2 = arith.constant 0 : i32
    return %c0_i32, %c0_i32_0, %c0_i32_1 : i32, i32, i32
  }
  func.func @transform_3(%arg0: i32) -> (i32, i32) {
    %c0_i32 = arith.constant 0 : i32
    %c0_i32_0 = arith.constant 0 : i32
    %c0_i32_1 = arith.constant 0 : i32
    return %c0_i32, %c0_i32_0 : i32, i32
  }
  func.func @transform_4(%arg0: i32) -> (i32, i32) {
    %c0_i32 = arith.constant 0 : i32
    %c0_i32_0 = arith.constant 0 : i32
    %c0_i32_1 = arith.constant 0 : i32
    return %c0_i32, %c0_i32_0 : i32, i32
  }
  func.func @transform_5(%arg0: i32) -> (i32, i32, i32) {
    %c0_i32 = arith.constant 0 : i32
    %c0_i32_0 = arith.constant 0 : i32
    %c0_i32_1 = arith.constant 0 : i32
    %c0_i32_2 = arith.constant 0 : i32
    return %c0_i32, %c0_i32_0, %c0_i32_1 : i32, i32, i32
  }
  func.func @transform_6(%arg0: i32) -> (i32, i32) {
    %c0_i32 = arith.constant 0 : i32
    %c0_i32_0 = arith.constant 0 : i32
    %c0_i32_1 = arith.constant 0 : i32
    return %c0_i32, %c0_i32_0 : i32, i32
  }
  func.func @transform_7(%arg0: i32) -> (i32, i32) {
    %c0_i32 = arith.constant 0 : i32
    %c0_i32_0 = arith.constant 0 : i32
    %c0_i32_1 = arith.constant 0 : i32
    return %c0_i32, %c0_i32_0 : i32, i32
  }
  func.func @transform_8(%arg0: i32) -> (i32, i32) {
    %c0_i32 = arith.constant 0 : i32
    %c0_i32_0 = arith.constant 0 : i32
    %c0_i32_1 = arith.constant 0 : i32
    return %c0_i32, %c0_i32_0 : i32, i32
  }
  func.func @transform_9(%arg0: i32) -> (i32, i32) {
    %c0_i32 = arith.constant 0 : i32
    %c0_i32_0 = arith.constant 0 : i32
    %c0_i32_1 = arith.constant 0 : i32
    return %c0_i32, %c0_i32_0 : i32, i32
  }
  func.func @transform_10(%arg0: i32) -> (i32, i32) {
    %c0_i32 = arith.constant 0 : i32
    %c0_i32_0 = arith.constant 0 : i32
    %c0_i32_1 = arith.constant 0 : i32
    return %c0_i32, %c0_i32_0 : i32, i32
  }
  func.func @transform_11(%arg0: i32) -> (i32, i32, i32) {
    %c0_i32 = arith.constant 0 : i32
    %c0_i32_0 = arith.constant 0 : i32
    %c0_i32_1 = arith.constant 0 : i32
    return %arg0, %c0_i32, %c0_i32_0 : i32, i32, i32
  }
}

</mosaic_0001>

<bundles_post_ra>
// kernel: cab_forward.1
= control target key start
LH: loop header
LB: loop body
LE: loop exit
PB: predicated region body
PF: predicated region fallthrough
CT: control target
= control target key end

     0   :  { %s1722_s17 = smov 0   ;;  %s2742_s0 = inlined_call_operand.vmem [shape: f32[2,16,256], index: 0, kind: input, shape index: {}]   ;;  %s2743_s1 = inlined_call_operand.vmem [shape: f32[3,256,64], index: 1, kind: input, shape index: {}]   ;;  %s2744_s2 = inlined_call_operand.vmem [shape: f32[3,256,64], index: 2, kind: input, shape index: {}]   ;;  %s2745_s3 = inlined_call_operand.vmem [shape: f32[1,64], index: 3, kind: input, shape index: {}]   ;;  %s2746_s4 = inlined_call_operand.vmem [shape: f32[1,64], index: 4, kind: input, shape index: {}]   ;;  %s2747_s5 = inlined_call_operand.vmem [shape: f32[3,64,256], index: 5, kind: input, shape index: {}]   ;;  %s2748_s6 = inlined_call_operand.vmem [shape: f32[1,256], index: 6, kind: input, shape index: {}]   ;;  %s2749_s7 = inlined_call_operand.vmem [shape: f32[256,4], index: 7, kind: input, shape index: {}]   ;;  %s2750_s8 = inlined_call_operand.vmem [shape: f32[1,4], index: 8, kind: input, shape index: {}]   ;;  %s2751_s9 = inlined_call_operand.vmem [shape: f32[2,256], index: 9, kind: input, shape index: {}]   ;;  %s2752_s10 = inlined_call_operand.vmem [shape: f32[1,256], index: 10, kind: input, shape index: {}]   ;;  %s2753_s11 = inlined_call_operand.vmem [shape: f32[2,16,256], index: 11, kind: output, shape index: {}]  }
   0x1 LB: > { %s1435_s18 = sadd.s32 4294967295, %s1659_s17   ;;  %p1439_p0 = scmp.ge.s32.totalorder %s1659_s17, 1  ;;  %s1659_s17 = sphi %s1722_s17, %s21_s17  }
   0x2   : > { %p337_p1 = scmp.lt.s32.totalorder %s1659_s17, 3 }
   0x4   : > { %p338_p2 = pnand %p1439_p0, %p337_p1 }
   0x5   : > { %p1918_p3 = scmp.lt.s32.totalorder (!%p338_p2), %s1435_s18, 1  ;;  %s1661_s28 = smov (!%p338_p2), 126  }
   0x6   : > { %341 = sbr.rel (%p338_p2) target bundleno = 845 (0x34d), region = 64 }
   0xb   : > { %v435_v0 = vld [vmem:[%s2743_s1 + $0x78] sm:$0xff]  ;;  %v434_v4 = vld [vmem:[%s2743_s1 + $0x70] sm:$0xff]  ;;  %v433_v8 = vld [vmem:[%s2743_s1 + $0x68] sm:$0xff]  ;;  %s2758_s18 = smov (!%p1918_p3, %s1435_s18), 1  ;;  %vm395_vm0 = vcmask 1040384   ;;  %vm617_vm2 = vcmask 1046528  }
   0xc   : > { %v451_v1 = vld [vmem:[%s2743_s1 + $0xf8] sm:$0xff]  ;;  %452 = vmatpush.msra.mxu0 %v435_v0  ;;  %v450_v5 = vld [vmem:[%s2743_s1 + $0xf0] sm:$0xff]  ;;  %v449_v9 = vld [vmem:[%s2743_s1 + $0xe8] sm:$0xff]  ;;  %s1632_s23 = sshll.u32 %s2758_s18, 5  ;;  %vm794_vm3 = vcmask 1045504   ;;  %vm971_vm4 = vcmask 523264  }
   0xd   : > { %v515_v2 = vld [vmem:[%s2744_s2 + $0x78] sm:$0xff]  ;;  %475 = vmatpush.msra.mxu1 %v451_v1  ;;  %v514_v6 = vld [vmem:[%s2744_s2 + $0x70] sm:$0xff]  ;;  %v513_v10 = vld [vmem:[%s2744_s2 + $0x68] sm:$0xff]  ;;  %s2000_s21 = scalar_lea.vmem %s2742_s0, %s1632_s23  ;;  %vm1287_vm5 = vcmask 1041408   ;;  %vm1283_vm6 = vcmask 15360   ;;  %s386_s13 = scalar_lea.vmem %s2753_s11, %s1632_s23 }
   0xe   : > { %v531_v3 = vld [vmem:[%s2744_s2 + $0xf8] sm:$0xff]  ;;  %532 = vmatpush.msra.mxu2 %v515_v2  ;;  %v530_v7 = vld [vmem:[%s2744_s2 + $0xf0] sm:$0xff]  ;;  %453 = vmatpush.msra.mxu0 %v434_v4  ;;  %v529_v11 = vld [vmem:[%s2744_s2 + $0xe8] sm:$0xff] }
   0xf   : > { %555 = vmatpush.msra.mxu3 %v531_v3  ;;  %476 = vmatpush.msra.mxu1 %v450_v5  ;;  %v432_v12 = vld [vmem:[%s2743_s1 + $0x60] sm:$0xff]  ;;  %v431_v16 = vld [vmem:[%s2743_s1 + $0x58] sm:$0xff]  ;;  %v430_v20 = vld [vmem:[%s2743_s1 + $0x50] sm:$0xff] }
  0x10   : > { %533 = vmatpush.msra.mxu2 %v514_v6  ;;  %v448_v13 = vld [vmem:[%s2743_s1 + $0xe0] sm:$0xff]  ;;  %454 = vmatpush.msra.mxu0 %v433_v8  ;;  %v447_v17 = vld [vmem:[%s2743_s1 + $0xd8] sm:$0xff]  ;;  %v446_v21 = vld [vmem:[%s2743_s1 + $0xd0] sm:$0xff] }
  0x11   : > { %556 = vmatpush.msra.mxu3 %v530_v7  ;;  %477 = vmatpush.msra.mxu1 %v449_v9  ;;  %v512_v14 = vld [vmem:[%s2744_s2 + $0x60] sm:$0xff]  ;;  %v511_v18 = vld [vmem:[%s2744_s2 + $0x58] sm:$0xff]  ;;  %v510_v22 = vld [vmem:[%s2744_s2 + $0x50] sm:$0xff] }
  0x12   : > { %v528_v15 = vld [vmem:[%s2744_s2 + $0xe0] sm:$0xff]  ;;  %534 = vmatpush.msra.mxu2 %v513_v10  ;;  %455 = vmatpush.msra.mxu0 %v432_v12  ;;  %v527_v19 = vld [vmem:[%s2744_s2 + $0xd8] sm:$0xff]  ;;  %v526_v23 = vld [vmem:[%s2744_s2 + $0xd0] sm:$0xff] }
  0x13   : > { %557 = vmatpush.msra.mxu3 %v529_v11  ;;  %478 = vmatpush.msra.mxu1 %v448_v13  ;;  %v429_v24 = vld [vmem:[%s2743_s1 + $0x48] sm:$0xff]  ;;  %v428_v28 = vld [vmem:[%s2743_s1 + $0x40] sm:$0xff]  ;;  %v427_v32 = vld [vmem:[%s2743_s1 + $0x38] sm:$0xff] }
  0x14   : > { %535 = vmatpush.msra.mxu2 %v512_v14  ;;  %456 = vmatpush.msra.mxu0 %v431_v16  ;;  %v445_v25 = vld [vmem:[%s2743_s1 + $0xc8] sm:$0xff]  ;;  %v444_v29 = vld [vmem:[%s2743_s1 + $0xc0] sm:$0xff]  ;;  %v443_v33 = vld [vmem:[%s2743_s1 + $0xb8] sm:$0xff] }
  0x15   : > { %558 = vmatpush.msra.mxu3 %v528_v15  ;;  %479 = vmatpush.msra.mxu1 %v447_v17  ;;  %v509_v26 = vld [vmem:[%s2744_s2 + $0x48] sm:$0xff]  ;;  %v508_v30 = vld [vmem:[%s2744_s2 + $0x40] sm:$0xff]  ;;  %v507_v34 = vld [vmem:[%s2744_s2 + $0x38] sm:$0xff] }
  0x16   : > { %536 = vmatpush.msra.mxu2 %v511_v18  ;;  %457 = vmatpush.msra.mxu0 %v430_v20  ;;  %v525_v27 = vld [vmem:[%s2744_s2 + $0xc8] sm:$0xff]  ;;  %v524_v31 = vld [vmem:[%s2744_s2 + $0xc0] sm:$0xff]  ;;  %v523_v35 = vld [vmem:[%s2744_s2 + $0xb8] sm:$0xff] }
  0x17   : > { %559 = vmatpush.msra.mxu3 %v527_v19  ;;  %480 = vmatpush.msra.mxu1 %v446_v21  ;;  %v426_v36 = vld [vmem:[%s2743_s1 + $0x30] sm:$0xff]  ;;  %v425_v40 = vld [vmem:[%s2743_s1 + $0x28] sm:$0xff]  ;;  %v424_v44 = vld [vmem:[%s2743_s1 + $0x20] sm:$0xff] }
  0x18   : > { %537 = vmatpush.msra.mxu2 %v510_v22  ;;  %458 = vmatpush.msra.mxu0 %v429_v24  ;;  %v442_v37 = vld [vmem:[%s2743_s1 + $0xb0] sm:$0xff]  ;;  %v441_v41 = vld [vmem:[%s2743_s1 + $0xa8] sm:$0xff]  ;;  %v440_v45 = vld [vmem:[%s2743_s1 + $0xa0] sm:$0xff] }
  0x19   : > { %560 = vmatpush.msra.mxu3 %v526_v23  ;;  %481 = vmatpush.msra.mxu1 %v445_v25  ;;  %v506_v38 = vld [vmem:[%s2744_s2 + $0x30] sm:$0xff]  ;;  %v505_v42 = vld [vmem:[%s2744_s2 + $0x28] sm:$0xff]  ;;  %v504_v46 = vld [vmem:[%s2744_s2 + $0x20] sm:$0xff] }
  0x1a   : > { %538 = vmatpush.msra.mxu2 %v509_v26  ;;  %459 = vmatpush.msra.mxu0 %v428_v28  ;;  %v522_v39 = vld [vmem:[%s2744_s2 + $0xb0] sm:$0xff]  ;;  %v521_v43 = vld [vmem:[%s2744_s2 + $0xa8] sm:$0xff]  ;;  %v520_v47 = vld [vmem:[%s2744_s2 + $0xa0] sm:$0xff] }
  0x1b   : > { %561 = vmatpush.msra.mxu3 %v525_v27  ;;  %482 = vmatpush.msra.mxu1 %v444_v29  ;;  %v423_v48 = vld [vmem:[%s2743_s1 + $0x18] sm:$0xff]  ;;  %v422_v52 = vld [vmem:[%s2743_s1 + $0x10] sm:$0xff]  ;;  %v421_v56 = vld [vmem:[%s2743_s1 + $0x8] sm:$0xff] }
  0x1c   : > { %539 = vmatpush.msra.mxu2 %v508_v30  ;;  %460 = vmatpush.msra.mxu0 %v427_v32  ;;  %v439_v49 = vld [vmem:[%s2743_s1 + $0x98] sm:$0xff]  ;;  %v438_v53 = vld [vmem:[%s2743_s1 + $0x90] sm:$0xff]  ;;  %v437_v57 = vld [vmem:[%s2743_s1 + $0x88] sm:$0xff] }
  0x1d   : > { %562 = vmatpush.msra.mxu3 %v524_v31  ;;  %483 = vmatpush.msra.mxu1 %v443_v33  ;;  %v503_v50 = vld [vmem:[%s2744_s2 + $0x18] sm:$0xff]  ;;  %v502_v54 = vld [vmem:[%s2744_s2 + $0x10] sm:$0xff]  ;;  %v501_v58 = vld [vmem:[%s2744_s2 + $0x8] sm:$0xff] }
  0x1e   : > { %540 = vmatpush.msra.mxu2 %v507_v34  ;;  %461 = vmatpush.msra.mxu0 %v426_v36  ;;  %v519_v51 = vld [vmem:[%s2744_s2 + $0x98] sm:$0xff]  ;;  %v518_v55 = vld [vmem:[%s2744_s2 + $0x90] sm:$0xff]  ;;  %v517_v59 = vld [vmem:[%s2744_s2 + $0x88] sm:$0xff] }
  0x1f   : > { %563 = vmatpush.msra.mxu3 %v523_v35  ;;  %484 = vmatpush.msra.mxu1 %v442_v37  ;;  %v420_v60 = vld [vmem:[%s2743_s1] sm:$0xff]  ;;  %v1467_v0 = vld [vmem:[%s2743_s1 + $0x178] sm:$0xff]  ;;  %v1466_v4 = vld [vmem:[%s2743_s1 + $0x170] sm:$0xff] }
  0x20   : > { %541 = vmatpush.msra.mxu2 %v506_v38  ;;  %462 = vmatpush.msra.mxu0 %v425_v40  ;;  %v436_v61 = vld [vmem:[%s2743_s1 + $0x80] sm:$0xff]  ;;  %v1483_v1 = vld [vmem:[%s2743_s1 + $0x1f8] sm:$0xff]  ;;  %v1482_v5 = vld [vmem:[%s2743_s1 + $0x1f0] sm:$0xff] }
  0x21   : > { %564 = vmatpush.msra.mxu3 %v522_v39  ;;  %485 = vmatpush.msra.mxu1 %v441_v41  ;;  %v500_v62 = vld [vmem:[%s2744_s2] sm:$0xff]  ;;  %v1499_v2 = vld [vmem:[%s2744_s2 + $0x178] sm:$0xff]  ;;  %v1498_v6 = vld [vmem:[%s2744_s2 + $0x170] sm:$0xff] }
  0x22   : > { %542 = vmatpush.msra.mxu2 %v505_v42  ;;  %463 = vmatpush.msra.mxu0 %v424_v44  ;;  %v516_v63 = vld [vmem:[%s2744_s2 + $0x80] sm:$0xff]  ;;  %v1515_v3 = vld [vmem:[%s2744_s2 + $0x1f8] sm:$0xff]  ;;  %v1514_v7 = vld [vmem:[%s2744_s2 + $0x1f0] sm:$0xff] }
  0x23   : > { %565 = vmatpush.msra.mxu3 %v521_v43  ;;  %486 = vmatpush.msra.mxu1 %v440_v45  ;;  %v1465_v8 = vld [vmem:[%s2743_s1 + $0x168] sm:$0xff]  ;;  %v1464_v12 = vld [vmem:[%s2743_s1 + $0x160] sm:$0xff]  ;;  %v1463_v16 = vld [vmem:[%s2743_s1 + $0x158] sm:$0xff] }
  0x24   : > { %543 = vmatpush.msra.mxu2 %v504_v46  ;;  %464 = vmatpush.msra.mxu0 %v423_v48  ;;  %v1481_v9 = vld [vmem:[%s2743_s1 + $0x1e8] sm:$0xff]  ;;  %v1480_v13 = vld [vmem:[%s2743_s1 + $0x1e0] sm:$0xff]  ;;  %v1479_v17 = vld [vmem:[%s2743_s1 + $0x1d8] sm:$0xff] }
  0x25   : > { %566 = vmatpush.msra.mxu3 %v520_v47  ;;  %487 = vmatpush.msra.mxu1 %v439_v49  ;;  %v1497_v10 = vld [vmem:[%s2744_s2 + $0x168] sm:$0xff]  ;;  %v1496_v14 = vld [vmem:[%s2744_s2 + $0x160] sm:$0xff]  ;;  %v1495_v18 = vld [vmem:[%s2744_s2 + $0x158] sm:$0xff] }
  0x26   : > { %544 = vmatpush.msra.mxu2 %v503_v50  ;;  %465 = vmatpush.msra.mxu0 %v422_v52  ;;  %v1513_v11 = vld [vmem:[%s2744_s2 + $0x1e8] sm:$0xff]  ;;  %v1512_v15 = vld [vmem:[%s2744_s2 + $0x1e0] sm:$0xff]  ;;  %v1511_v19 = vld [vmem:[%s2744_s2 + $0x1d8] sm:$0xff] }
  0x27   : > { %567 = vmatpush.msra.mxu3 %v519_v51  ;;  %488 = vmatpush.msra.mxu1 %v438_v53  ;;  %v1462_v20 = vld [vmem:[%s2743_s1 + $0x150] sm:$0xff]  ;;  %v1461_v24 = vld [vmem:[%s2743_s1 + $0x148] sm:$0xff]  ;;  %v387_v26 = vld [vmem:[%s2000_s21] sm:$0xff] }
  0x28   : > { %545 = vmatpush.msra.mxu2 %v502_v54  ;;  %466 = vmatpush.msra.mxu0 %v421_v56  ;;  %v1478_v21 = vld [vmem:[%s2743_s1 + $0x1d0] sm:$0xff]  ;;  %v1477_v25 = vld [vmem:[%s2743_s1 + $0x1c8] sm:$0xff]  ;;  %v1460_v30 = vld [vmem:[%s2743_s1 + $0x140] sm:$0xff]  ;;  %v2040_v34 = vrot.slane %v387_v26, 7 }
  0x29   : > { %568 = vmatpush.msra.mxu3 %v518_v55  ;;  %489 = vmatpush.msra.mxu1 %v437_v57  ;;  %v1494_v22 = vld [vmem:[%s2744_s2 + $0x150] sm:$0xff]  ;;  %v388_v27 = vld [vmem:[%s2000_s21 + $0x8] sm:$0xff]  ;;  %v1476_v31 = vld [vmem:[%s2743_s1 + $0x1c0] sm:$0xff] }
  0x2a   : > { %546 = vmatpush.msra.mxu2 %v501_v58  ;;  %467 = vmatpush.msra.mxu0 %v420_v60  ;;  %v1510_v23 = vld [vmem:[%s2744_s2 + $0x1d0] sm:$0xff]  ;;  %v1493_v28 = vld [vmem:[%s2744_s2 + $0x148] sm:$0xff]  ;;  %v1492_v32 = vld [vmem:[%s2744_s2 + $0x140] sm:$0xff]  ;;  %v2042_v35 = vrot.slane %v388_v27, 7 }
  0x2b   : > { %569 = vmatpush.msra.mxu3 %v517_v59  ;;  %490 = vmatpush.msra.mxu1 %v436_v61  ;;  %v1509_v29 = vld [vmem:[%s2744_s2 + $0x1c8] sm:$0xff]  ;;  %v1508_v33 = vld [vmem:[%s2744_s2 + $0x1c0] sm:$0xff]  ;;  %vm2045_vm1 = vmneg %vm395_vm0 }
  0x2c   : > { %547 = vmatpush.msra.mxu2 %v500_v62  ;;  %632 = vmatpush.msrb.mxu0 %v1467_v0  ;;  %v1459_v37 = vld [vmem:[%s2743_s1 + $0x138] sm:$0xff]  ;;  %v1458_v41 = vld [vmem:[%s2743_s1 + $0x130] sm:$0xff]  ;;  %v1457_v47 = vld [vmem:[%s2743_s1 + $0x128] sm:$0xff] }
  0x2d   : > { %570 = vmatpush.msra.mxu3 %v516_v63  ;;  %655 = vmatpush.msrb.mxu1 %v1483_v1  ;;  %v1475_v38 = vld [vmem:[%s2743_s1 + $0x1b8] sm:$0xff]  ;;  %v1474_v42 = vld [vmem:[%s2743_s1 + $0x1b0] sm:$0xff]  ;;  %v1473_v48 = vld [vmem:[%s2743_s1 + $0x1a8] sm:$0xff] }
  0x2e   : > { %713 = vmatpush.msrb.mxu2 %v1499_v2  ;;  %633 = vmatpush.msrb.mxu0 %v1466_v4  ;;  %v1491_v39 = vld [vmem:[%s2744_s2 + $0x138] sm:$0xff]  ;;  %v2074_v43 = vld [vmem:[%s2000_s21 + $0x10] sm:$0xff]  ;;  %v1489_v49 = vld [vmem:[%s2744_s2 + $0x128] sm:$0xff] }
  0x2f   : > { %736 = vmatpush.msrb.mxu3 %v1515_v3  ;;  %656 = vmatpush.msrb.mxu1 %v1482_v5  ;;  %v1507_v40 = vld [vmem:[%s2744_s2 + $0x1b8] sm:$0xff]  ;;  %v1490_v45 = vld [vmem:[%s2744_s2 + $0x130] sm:$0xff]  ;;  %v1505_v50 = vld [vmem:[%s2744_s2 + $0x1a8] sm:$0xff]  ;;  %v398_v51 = vrot.slane %v2074_v43, 7  ;;  %v2163_v5 = vsel %vm395_vm0, 0.0, %v2040_v34 }
  0x30   : > { %714 = vmatpush.msrb.mxu2 %v1498_v6  ;;  %634 = vmatpush.msrb.mxu0 %v1465_v8  ;;  %v2077_v44 = vld [vmem:[%s2000_s21 + $0x18] sm:$0xff]  ;;  %v1506_v46 = vld [vmem:[%s2744_s2 + $0x1b0] sm:$0xff]  ;;  %v1456_v53 = vld [vmem:[%s2743_s1 + $0x120] sm:$0xff]  ;;  %v2167_v6 = vsel %vm395_vm0, 0.0, %v2042_v35 }
  0x31   : > { %737 = vmatpush.msrb.mxu3 %v1514_v7  ;;  %657 = vmatpush.msrb.mxu1 %v1481_v9  ;;  %v400_v52 = vrot.slane %v2077_v44, 7  ;;  %v1472_v54 = vld [vmem:[%s2743_s1 + $0x1a0] sm:$0xff]  ;;  %v2121_v57 = vsel %vm395_vm0, %v2040_v34, %v398_v51  ;;  %v1455_v59 = vld [vmem:[%s2743_s1 + $0x118] sm:$0xff]  ;;  %v1454_v63 = vld [vmem:[%s2743_s1 + $0x110] sm:$0xff] }
  0x32   : > { %715 = vmatpush.msrb.mxu2 %v1497_v10  ;;  %635 = vmatpush.msrb.mxu0 %v1464_v12  ;;  %v1488_v55 = vld [vmem:[%s2744_s2 + $0x120] sm:$0xff]  ;;  %v1471_v60 = vld [vmem:[%s2743_s1 + $0x198] sm:$0xff]  ;;  %v1470_v0 = vld [vmem:[%s2743_s1 + $0x190] sm:$0xff]  ;;  %v619_v12 = vrot.slane %v2121_v57, 1 }
  0x33   : > { %738 = vmatpush.msrb.mxu3 %v1513_v11  ;;  %658 = vmatpush.msrb.mxu1 %v1480_v13  ;;  %v1504_v56 = vld [vmem:[%s2744_s2 + $0x1a0] sm:$0xff]  ;;  %v2127_v58 = vsel %vm395_vm0, %v2042_v35, %v400_v52  ;;  %v1487_v61 = vld [vmem:[%s2744_s2 + $0x118] sm:$0xff]  ;;  %v1486_v1 = vld [vmem:[%s2744_s2 + $0x110] sm:$0xff]  ;;  %v618_v11 = vrot.slane %v2163_v5, 1  ;;  %v621_v13 = vrot.slane %v2167_v6, 1 }
  0x34   : > { %716 = vmatpush.msrb.mxu2 %v1496_v14  ;;  %636 = vmatpush.msrb.mxu0 %v1463_v16  ;;  %v1503_v62 = vld [vmem:[%s2744_s2 + $0x198] sm:$0xff]  ;;  %v1502_v2 = vld [vmem:[%s2744_s2 + $0x190] sm:$0xff]  ;;  %v1453_v3 = vld [vmem:[%s2743_s1 + $0x108] sm:$0xff]  ;;  %v622_v14 = vrot.slane %v2127_v58, 1 }
  0x35   : > { %739 = vmatpush.msrb.mxu3 %v1512_v15  ;;  %659 = vmatpush.msrb.mxu1 %v1479_v17  ;;  %v1469_v4 = vld [vmem:[%s2743_s1 + $0x188] sm:$0xff]  ;;  %v1452_v9 = vld [vmem:[%s2743_s1 + $0x100] sm:$0xff]  ;;  %v1531_v17 = vld [vmem:[%s2743_s1 + $0x278] sm:$0xff] }
  0x36   : > { %717 = vmatpush.msrb.mxu2 %v1495_v18  ;;  %637 = vmatpush.msrb.mxu0 %v1462_v20  ;;  %v1485_v7 = vld [vmem:[%s2744_s2 + $0x108] sm:$0xff]  ;;  %v1468_v10 = vld [vmem:[%s2743_s1 + $0x180] sm:$0xff]  ;;  %v1547_v18 = vld [vmem:[%s2743_s1 + $0x2f8] sm:$0xff] }
  0x37   : > { %740 = vmatpush.msrb.mxu3 %v1511_v19  ;;  %660 = vmatpush.msrb.mxu1 %v1478_v21  ;;  %v1501_v8 = vld [vmem:[%s2744_s2 + $0x188] sm:$0xff]  ;;  %v1484_v15 = vld [vmem:[%s2744_s2 + $0x100] sm:$0xff]  ;;  %v1563_v19 = vld [vmem:[%s2744_s2 + $0x278] sm:$0xff]  ;;  %v620_v21 = vsel %vm617_vm2, %v618_v11, %v619_v12 }
  0x38   : > { %718 = vmatpush.msrb.mxu2 %v1494_v22  ;;  %638 = vmatpush.msrb.mxu0 %v1461_v24  ;;  %v1500_v16 = vld [vmem:[%s2744_s2 + $0x180] sm:$0xff]  ;;  %v1579_v20 = vld [vmem:[%s2744_s2 + $0x2f8] sm:$0xff]  ;;  %v623_v22 = vsel %vm617_vm2, %v621_v13, %v622_v14  ;;  %v1546_v24 = vld [vmem:[%s2743_s1 + $0x2f0] sm:$0xff] }
  0x39   : > { %741 = vmatpush.msrb.mxu3 %v1510_v23  ;;  %661 = vmatpush.msrb.mxu1 %v1477_v25  ;;  %v1530_v23 = vld [vmem:[%s2743_s1 + $0x270] sm:$0xff]  ;;  %v1529_v27 = vld [vmem:[%s2743_s1 + $0x268] sm:$0xff]  ;;  %v1576_v36 = vld [vmem:[%s2744_s2 + $0x2e0] sm:$0xff] }
  0x3a   : > { %719 = vmatpush.msrb.mxu2 %v1493_v28  ;;  %639 = vmatpush.msrb.mxu0 %v1460_v30  ;;  %v1562_v25 = vld [vmem:[%s2744_s2 + $0x270] sm:$0xff]  ;;  %v1545_v28 = vld [vmem:[%s2743_s1 + $0x2e8] sm:$0xff]  ;;  %v2233_v30 = vsel %vm395_vm0, %v400_v52, 0.0  ;;  %v1552_v11 = vld [vmem:[%s2744_s2 + $0x220] sm:$0xff] }
  0x3b   : > { %742 = vmatpush.msrb.mxu3 %v1509_v29  ;;  %662 = vmatpush.msrb.mxu1 %v1476_v31  ;;  %v1578_v26 = vld [vmem:[%s2744_s2 + $0x2f0] sm:$0xff]  ;;  %v2228_v29 = vsel %vm395_vm0, %v398_v51, 0.0  ;;  %v1561_v31 = vld [vmem:[%s2744_s2 + $0x268] sm:$0xff]  ;;  %v1519_v13 = vld [vmem:[%s2743_s1 + $0x218] sm:$0xff] }
  0x3c   : > { %720 = vmatpush.msrb.mxu2 %v1492_v32  ;;  %1451 = vmatmul.msk.f32.vlgmr.msra.gmra.mxu3 %vm2045_vm1, %v2042_v35  ;;  %v1577_v32 = vld [vmem:[%s2744_s2 + $0x2e8] sm:$0xff] }
  0x3d   : > { %743 = vmatpush.msrb.mxu3 %v1508_v33  ;;  %1449 = vmatmul.msk.f32.vlgmr.msra.gmra.mxu2 %vm2045_vm1, %v2040_v34  ;;  %v1528_v33 = vld [vmem:[%s2743_s1 + $0x260] sm:$0xff]  ;;  %v1557_v51 = vld [vmem:[%s2744_s2 + $0x248] sm:$0xff] }
  0x3e   : > { %640 = vmatpush.msrb.mxu0 %v1459_v37  ;;  %663 = vmatpush.msrb.mxu1 %v1475_v38  ;;  %v624_v37 = vrot.slane %v2228_v29, 1  ;;  %v626_v38 = vrot.slane %v2233_v30, 1  ;;  %v1573_v52 = vld [vmem:[%s2744_s2 + $0x2c8] sm:$0xff] }
  0x3f   : > { %721 = vmatpush.msrb.mxu2 %v1491_v39  ;;  %744 = vmatpush.msrb.mxu3 %v1507_v40  ;;  %v1527_v39 = vld [vmem:[%s2743_s1 + $0x258] sm:$0xff] }
  0x40   : > { %641 = vmatpush.msrb.mxu0 %v1458_v41  ;;  %664 = vmatpush.msrb.mxu1 %v1474_v42  ;;  %v1543_v40 = vld [vmem:[%s2743_s1 + $0x2d8] sm:$0xff]  ;;  %v625_v43 = vsel %vm617_vm2, %v619_v12, %v624_v37  ;;  %v627_v44 = vsel %vm617_vm2, %v622_v14, %v626_v38  ;;  %v1568_v12 = vld [vmem:[%s2744_s2 + $0x2a0] sm:$0xff] }
  0x41   : > { %722 = vmatpush.msrb.mxu2 %v1490_v45  ;;  %745 = vmatpush.msrb.mxu3 %v1506_v46  ;;  %v1559_v41 = vld [vmem:[%s2744_s2 + $0x258] sm:$0xff]  ;;  %v1526_v45 = vld [vmem:[%s2743_s1 + $0x250] sm:$0xff] }
  0x42   : > { %642 = vmatpush.msrb.mxu0 %v1457_v47  ;;  %665 = vmatpush.msrb.mxu1 %v1473_v48  ;;  %v1575_v42 = vld [vmem:[%s2744_s2 + $0x2d8] sm:$0xff]  ;;  %v1542_v46 = vld [vmem:[%s2743_s1 + $0x2d0] sm:$0xff] }
  0x43   : > { %723 = vmatpush.msrb.mxu2 %v1489_v49  ;;  %746 = vmatpush.msrb.mxu3 %v1505_v50  ;;  %v1558_v47 = vld [vmem:[%s2744_s2 + $0x250] sm:$0xff]  ;;  %v1525_v49 = vld [vmem:[%s2743_s1 + $0x248] sm:$0xff]  ;;  %v1535_v14 = vld [vmem:[%s2743_s1 + $0x298] sm:$0xff] }
  0x44   : > { %1445 = vmatmul.msk.f32.vlgmr.msra.gmra.mxu0 %vm2045_vm1, %v2040_v34  ;;  %1447 = vmatmul.msk.f32.vlgmr.msra.gmra.mxu1 %vm2045_vm1, %v2042_v35  ;;  %v1544_v34 = vld [vmem:[%s2743_s1 + $0x2e0] sm:$0xff]  ;;  %v1574_v48 = vld [vmem:[%s2744_s2 + $0x2d0] sm:$0xff]  ;;  %v1541_v50 = vld [vmem:[%s2743_s1 + $0x2c8] sm:$0xff] }
  0x45   : > { %643 = vmatpush.msrb.mxu0 %v1456_v53  ;;  %666 = vmatpush.msrb.mxu1 %v1472_v54  ;;  %v1560_v35 = vld [vmem:[%s2744_s2 + $0x260] sm:$0xff] }
  0x46   : > { %724 = vmatpush.msrb.mxu2 %v1488_v55  ;;  %747 = vmatpush.msrb.mxu3 %v1504_v56  ;;  %v1524_v53 = vld [vmem:[%s2743_s1 + $0x240] sm:$0xff] }
  0x47   : > { %551 = vmatmul.f32.gmra.mxu2 %v2121_v57  ;;  %574 = vmatmul.f32.gmra.mxu3 %v2127_v58  ;;  %v1540_v54 = vld [vmem:[%s2743_s1 + $0x2c0] sm:$0xff] }
  0x48   : > { %644 = vmatpush.msrb.mxu0 %v1455_v59  ;;  %667 = vmatpush.msrb.mxu1 %v1471_v60  ;;  %v1556_v55 = vld [vmem:[%s2744_s2 + $0x240] sm:$0xff]  ;;  %v1523_v59 = vld [vmem:[%s2743_s1 + $0x238] sm:$0xff] }
  0x49   : > { %725 = vmatpush.msrb.mxu2 %v1487_v61  ;;  %748 = vmatpush.msrb.mxu3 %v1503_v62  ;;  %v1572_v56 = vld [vmem:[%s2744_s2 + $0x2c0] sm:$0xff]  ;;  %v1539_v60 = vld [vmem:[%s2743_s1 + $0x2b8] sm:$0xff] }
  0x4a   : > { %645 = vmatpush.msrb.mxu0 %v1454_v63  ;;  %668 = vmatpush.msrb.mxu1 %v1470_v0  ;;  %v1555_v61 = vld [vmem:[%s2744_s2 + $0x238] sm:$0xff]  ;;  %v1522_v63 = vld [vmem:[%s2743_s1 + $0x230] sm:$0xff] }
  0x4b   : > { %726 = vmatpush.msrb.mxu2 %v1486_v1  ;;  %749 = vmatpush.msrb.mxu3 %v1502_v2  ;;  %v1571_v62 = vld [vmem:[%s2744_s2 + $0x2b8] sm:$0xff]  ;;  %v1538_v0 = vld [vmem:[%s2743_s1 + $0x2b0] sm:$0xff] }
  0x4c   : > { %646 = vmatpush.msrb.mxu0 %v1453_v3  ;;  %669 = vmatpush.msrb.mxu1 %v1469_v4  ;;  %v1554_v1 = vld [vmem:[%s2744_s2 + $0x230] sm:$0xff]  ;;  %v1521_v3 = vld [vmem:[%s2743_s1 + $0x228] sm:$0xff] }
  0x4d   : > { %727 = vmatpush.msrb.mxu2 %v1485_v7  ;;  %750 = vmatpush.msrb.mxu3 %v1501_v8  ;;  %v1570_v2 = vld [vmem:[%s2744_s2 + $0x2b0] sm:$0xff]  ;;  %v1537_v4 = vld [vmem:[%s2743_s1 + $0x2a8] sm:$0xff] }
  0x4e   : > { %471 = vmatmul.f32.gmra.mxu0 %v2121_v57  ;;  %494 = vmatmul.f32.gmra.mxu1 %v2127_v58  ;;  %v1553_v7 = vld [vmem:[%s2744_s2 + $0x228] sm:$0xff] }
  0x4f   : > { %647 = vmatpush.msrb.mxu0 %v1452_v9  ;;  %670 = vmatpush.msrb.mxu1 %v1468_v10  ;;  %v1569_v8 = vld [vmem:[%s2744_s2 + $0x2a8] sm:$0xff]  ;;  %v1520_v9 = vld [vmem:[%s2743_s1 + $0x220] sm:$0xff] }
  0x50   : > { %728 = vmatpush.msrb.mxu2 %v1484_v15  ;;  %751 = vmatpush.msrb.mxu3 %v1500_v16  ;;  %v1536_v10 = vld [vmem:[%s2743_s1 + $0x2a0] sm:$0xff]  ;;  %v1551_v15 = vld [vmem:[%s2744_s2 + $0x218] sm:$0xff] }
  0x51   : > { %809 = vmatpush.msra.mxu0 %v1531_v17  ;;  %832 = vmatpush.msra.mxu1 %v1547_v18  ;;  %v1567_v16 = vld [vmem:[%s2744_s2 + $0x298] sm:$0xff]  ;;  %v1518_v17 = vld [vmem:[%s2743_s1 + $0x210] sm:$0xff] }
  0x52   : > { %890 = vmatpush.msra.mxu2 %v1563_v19  ;;  %913 = vmatpush.msra.mxu3 %v1579_v20  ;;  %v1534_v18 = vld [vmem:[%s2743_s1 + $0x290] sm:$0xff] }
  0x53   : > { %729 = vmatmul.f32.vlgmr.msrb.gmra.mxu2 %v620_v21  ;;  %752 = vmatmul.f32.vlgmr.msrb.gmra.mxu3 %v623_v22  ;;  %v1550_v19 = vld [vmem:[%s2744_s2 + $0x210] sm:$0xff] }
  0x54   : > { %810 = vmatpush.msra.mxu0 %v1530_v23  ;;  %833 = vmatpush.msra.mxu1 %v1546_v24  ;;  %v1566_v20 = vld [vmem:[%s2744_s2 + $0x290] sm:$0xff]  ;;  %v1517_v23 = vld [vmem:[%s2743_s1 + $0x208] sm:$0xff] }
  0x55   : > { %891 = vmatpush.msra.mxu2 %v1562_v25  ;;  %914 = vmatpush.msra.mxu3 %v1578_v26  ;;  %v1533_v24 = vld [vmem:[%s2743_s1 + $0x288] sm:$0xff]  ;;  %v795_v25 = vrot.slane %v2163_v5, 2  ;;  %v798_v26 = vrot.slane %v2167_v6, 2  ;;  %v1532_v5 = vld [vmem:[%s2743_s1 + $0x280] sm:$0xff] }
  0x56   : > { %811 = vmatpush.msra.mxu0 %v1529_v27  ;;  %834 = vmatpush.msra.mxu1 %v1545_v28  ;;  %v1516_v27 = vld [vmem:[%s2743_s1 + $0x200] sm:$0xff] }
  0x57   : > { %892 = vmatpush.msra.mxu2 %v1561_v31  ;;  %915 = vmatpush.msra.mxu3 %v1577_v32  ;;  %v1548_v6 = vld [vmem:[%s2744_s2 + $0x200] sm:$0xff] }
  0x58   : > { %812 = vmatpush.msra.mxu0 %v1528_v33  ;;  %835 = vmatpush.msra.mxu1 %v1544_v34  ;;  %v1564_v28 = vld [vmem:[%s2744_s2 + $0x280] sm:$0xff]  ;;  %v801_v33 = vrot.slane %v2228_v29, 2  ;;  %v803_v34 = vrot.slane %v2233_v30, 2  ;;  %v969_v29 = vld [vmem:[%s2747_s5 + $0x70] sm:$0xff]  ;;  %v970_v30 = vld [vmem:[%s2747_s5 + $0x78] sm:$0xff] }
  0x59   : > { %893 = vmatpush.msra.mxu2 %v1560_v35  ;;  %916 = vmatpush.msra.mxu3 %v1576_v36 }
  0x5a   : > { %648 = vmatmul.f32.vlgmr.msrb.gmra.mxu0 %v620_v21  ;;  %671 = vmatmul.f32.vlgmr.msrb.gmra.mxu1 %v623_v22  ;;  %v796_v21 = vrot.slane %v2121_v57, 2  ;;  %v799_v22 = vrot.slane %v2127_v58, 2  ;;  %v1549_v57 = vld [vmem:[%s2744_s2 + $0x208] sm:$0xff] }
  0x5b   : > { %813 = vmatpush.msra.mxu0 %v1527_v39  ;;  %836 = vmatpush.msra.mxu1 %v1543_v40  ;;  %v1565_v58 = vld [vmem:[%s2744_s2 + $0x288] sm:$0xff] }
  0x5c   : > { %894 = vmatpush.msra.mxu2 %v1559_v41  ;;  %917 = vmatpush.msra.mxu3 %v1575_v42  ;;  %v797_v31 = vsel %vm794_vm3, %v795_v25, %v796_v21  ;;  %v800_v32 = vsel %vm794_vm3, %v798_v26, %v799_v22  ;;  %v802_v35 = vsel %vm794_vm3, %v796_v21, %v801_v33  ;;  %v967_v41 = vld [vmem:[%s2747_s5 + $0x60] sm:$0xff]  ;;  %v968_v42 = vld [vmem:[%s2747_s5 + $0x68] sm:$0xff] }
  0x5d   : > { %732 = vmatmul.f32.gmra.mxu2 %v625_v43  ;;  %755 = vmatmul.f32.gmra.mxu3 %v627_v44  ;;  %v804_v36 = vsel %vm794_vm3, %v799_v22, %v803_v34  ;;  %v1612_v21 = vld [vmem:[%s2747_s5 + $0x140] sm:$0xff]  ;;  %v1613_v22 = vld [vmem:[%s2747_s5 + $0x148] sm:$0xff] }
  0x5e   : > { %814 = vmatpush.msra.mxu0 %v1526_v45  ;;  %837 = vmatpush.msra.mxu1 %v1542_v46  ;;  %v1604_v33 = vld [vmem:[%s2747_s5 + $0x100] sm:$0xff]  ;;  %v1605_v34 = vld [vmem:[%s2747_s5 + $0x108] sm:$0xff] }
  0x5f   : > { %895 = vmatpush.msra.mxu2 %v1558_v47  ;;  %918 = vmatpush.msra.mxu3 %v1574_v48  ;;  %v963_v47 = vld [vmem:[%s2747_s5 + $0x40] sm:$0xff]  ;;  %v964_v48 = vld [vmem:[%s2747_s5 + $0x48] sm:$0xff] }
  0x60   : > { %815 = vmatpush.msra.mxu0 %v1525_v49  ;;  %838 = vmatpush.msra.mxu1 %v1541_v50  ;;  %v961_v49 = vld [vmem:[%s2747_s5 + $0x30] sm:$0xff]  ;;  %v962_v50 = vld [vmem:[%s2747_s5 + $0x38] sm:$0xff] }
  0x61   : > { %896 = vmatpush.msra.mxu2 %v1557_v51  ;;  %919 = vmatpush.msra.mxu3 %v1573_v52 }
  0x62   : > { %816 = vmatpush.msra.mxu0 %v1524_v53  ;;  %839 = vmatpush.msra.mxu1 %v1540_v54  ;;  %v959_v53 = vld [vmem:[%s2747_s5 + $0x20] sm:$0xff]  ;;  %v960_v54 = vld [vmem:[%s2747_s5 + $0x28] sm:$0xff] }
  0x63   : > { %897 = vmatpush.msra.mxu2 %v1556_v55  ;;  %920 = vmatpush.msra.mxu3 %v1572_v56  ;;  %v1598_v55 = vld [vmem:[%s2747_s5 + $0xf0] sm:$0xff]  ;;  %v1599_v56 = vld [vmem:[%s2747_s5 + $0xf8] sm:$0xff] }
  0x64   : > { %651 = vmatmul.f32.gmra.mxu0 %v625_v43  ;;  %674 = vmatmul.f32.gmra.mxu1 %v627_v44  ;;  %v965_v43 = vld [vmem:[%s2747_s5 + $0x50] sm:$0xff]  ;;  %v966_v44 = vld [vmem:[%s2747_s5 + $0x58] sm:$0xff] }
  0x65   : > { %817 = vmatpush.msra.mxu0 %v1523_v59  ;;  %840 = vmatpush.msra.mxu1 %v1539_v60  ;;  %v957_v59 = vld [vmem:[%s2747_s5 + $0x10] sm:$0xff]  ;;  %v958_v60 = vld [vmem:[%s2747_s5 + $0x18] sm:$0xff] }
  0x66   : > { %898 = vmatpush.msra.mxu2 %v1555_v61  ;;  %921 = vmatpush.msra.mxu3 %v1571_v62  ;;  %v1596_v61 = vld [vmem:[%s2747_s5 + $0xe0] sm:$0xff]  ;;  %v1597_v62 = vld [vmem:[%s2747_s5 + $0xe8] sm:$0xff] }
  0x67   : > { %818 = vmatpush.msra.mxu0 %v1522_v63  ;;  %841 = vmatpush.msra.mxu1 %v1538_v0 }
  0x68   : > { %899 = vmatpush.msra.mxu2 %v1554_v1  ;;  %922 = vmatpush.msra.mxu3 %v1570_v2  ;;  %v955_v1 = vld [vmem:[%s2747_s5] sm:$0xff]  ;;  %v956_v2 = vld [vmem:[%s2747_s5 + $0x8] sm:$0xff] }
  0x69   : > { %819 = vmatpush.msra.mxu0 %v1521_v3  ;;  %842 = vmatpush.msra.mxu1 %v1537_v4  ;;  %v1594_v3 = vld [vmem:[%s2747_s5 + $0xd0] sm:$0xff]  ;;  %v1595_v4 = vld [vmem:[%s2747_s5 + $0xd8] sm:$0xff] }
  0x6a   : > { %900 = vmatpush.msra.mxu2 %v1553_v7  ;;  %923 = vmatpush.msra.mxu3 %v1569_v8  ;;  %v1618_v7 = vld [vmem:[%s2747_s5 + $0x170] sm:$0xff]  ;;  %v1619_v8 = vld [vmem:[%s2747_s5 + $0x178] sm:$0xff] }
  0x6b   : > { %820 = vmatpush.msra.mxu0 %v1520_v9  ;;  %843 = vmatpush.msra.mxu1 %v1536_v10  ;;  %v1592_v9 = vld [vmem:[%s2747_s5 + $0xc0] sm:$0xff]  ;;  %v1593_v10 = vld [vmem:[%s2747_s5 + $0xc8] sm:$0xff] }
  0x6c   : > { %901 = vmatpush.msra.mxu2 %v1552_v11  ;;  %924 = vmatpush.msra.mxu3 %v1568_v12  ;;  %v1616_v11 = vld [vmem:[%s2747_s5 + $0x160] sm:$0xff]  ;;  %v1617_v12 = vld [vmem:[%s2747_s5 + $0x168] sm:$0xff] }
  0x6d   : > { %821 = vmatpush.msra.mxu0 %v1519_v13  ;;  %844 = vmatpush.msra.mxu1 %v1535_v14  ;;  %v1590_v13 = vld [vmem:[%s2747_s5 + $0xb0] sm:$0xff]  ;;  %v1591_v14 = vld [vmem:[%s2747_s5 + $0xb8] sm:$0xff] }
  0x6e   : > { %902 = vmatpush.msra.mxu2 %v1551_v15  ;;  %925 = vmatpush.msra.mxu3 %v1567_v16 }
  0x6f   : > { %822 = vmatpush.msra.mxu0 %v1518_v17  ;;  %845 = vmatpush.msra.mxu1 %v1534_v18  ;;  %v1614_v17 = vld [vmem:[%s2747_s5 + $0x150] sm:$0xff]  ;;  %v1615_v18 = vld [vmem:[%s2747_s5 + $0x158] sm:$0xff] }
  0x70   : > { %903 = vmatpush.msra.mxu2 %v1550_v19  ;;  %926 = vmatpush.msra.mxu3 %v1566_v20  ;;  %v1588_v19 = vld [vmem:[%s2747_s5 + $0xa0] sm:$0xff]  ;;  %v1589_v20 = vld [vmem:[%s2747_s5 + $0xa8] sm:$0xff] }
  0x71   : > { %823 = vmatpush.msra.mxu0 %v1517_v23  ;;  %846 = vmatpush.msra.mxu1 %v1533_v24  ;;  %v1586_v23 = vld [vmem:[%s2747_s5 + $0x90] sm:$0xff]  ;;  %v1587_v24 = vld [vmem:[%s2747_s5 + $0x98] sm:$0xff] }
  0x72   : > { %904 = vmatpush.msra.mxu2 %v1549_v57  ;;  %927 = vmatpush.msra.mxu3 %v1565_v58  ;;  %v1584_v57 = vld [vmem:[%s2747_s5 + $0x80] sm:$0xff]  ;;  %v1610_v58 = vld [vmem:[%s2747_s5 + $0x130] sm:$0xff] }
  0x73   : > { %824 = vmatpush.msra.mxu0 %v1516_v27  ;;  %847 = vmatpush.msra.mxu1 %v1532_v5  ;;  %v1611_v27 = vld [vmem:[%s2747_s5 + $0x138] sm:$0xff]  ;;  %v1585_v5 = vld [vmem:[%s2747_s5 + $0x88] sm:$0xff] }
  0x74   : > { %905 = vmatpush.msra.mxu2 %v1548_v6  ;;  %928 = vmatpush.msra.mxu3 %v1564_v28  ;;  %v1608_v6 = vld [vmem:[%s2747_s5 + $0x120] sm:$0xff]  ;;  %v1609_v28 = vld [vmem:[%s2747_s5 + $0x128] sm:$0xff] }
  0x75   : > { %825 = vmatmul.f32.vlgmr.msra.gmra.mxu0 %v797_v31  ;;  %848 = vmatmul.f32.vlgmr.msra.gmra.mxu1 %v800_v32 }
  0x76   : > { %906 = vmatmul.f32.vlgmr.msra.gmra.mxu2 %v797_v31  ;;  %929 = vmatmul.f32.vlgmr.msra.gmra.mxu3 %v800_v32  ;;  %v1606_v31 = vld [vmem:[%s2747_s5 + $0x110] sm:$0xff]  ;;  %v1607_v32 = vld [vmem:[%s2747_s5 + $0x118] sm:$0xff] }
  0x77   : > { %985 = vmatpush.msrb.mxu0 %v969_v29  ;;  %1008 = vmatpush.msrb.mxu1 %v970_v30  ;;  %v1643_v29 = vld [vmem:[%s2745_s3] ss:$0 sm:$0xff] }
  0x78   : > { %1062 = vmatpush.msrb.mxu2 %v1598_v55  ;;  %1085 = vmatpush.msrb.mxu3 %v1599_v56 }
  0x79   : > { %986 = vmatpush.msrb.mxu0 %v967_v41  ;;  %1009 = vmatpush.msrb.mxu1 %v968_v42  ;;  %v1644_v41 = vld [vmem:[%s2746_s4] ss:$0 sm:$0xff] }
  0x7a   : > { %1063 = vmatpush.msrb.mxu2 %v1596_v61  ;;  %1086 = vmatpush.msrb.mxu3 %v1597_v62 }
  0x7b   : > { %987 = vmatpush.msrb.mxu0 %v965_v43  ;;  %1010 = vmatpush.msrb.mxu1 %v966_v44 }
  0x7c   : > { %1064 = vmatpush.msrb.mxu2 %v1594_v3  ;;  %1087 = vmatpush.msrb.mxu3 %v1595_v4 }
  0x7d   : > { %828 = vmatmul.f32.gmra.mxu0 %v802_v35  ;;  %851 = vmatmul.f32.gmra.mxu1 %v804_v36 }
  0x7e   : > { %909 = vmatmul.f32.gmra.mxu2 %v802_v35  ;;  %932 = vmatmul.f32.gmra.mxu3 %v804_v36 }
  0x7f   : > { %988 = vmatpush.msrb.mxu0 %v963_v47  ;;  %1011 = vmatpush.msrb.mxu1 %v964_v48 }
  0x80   : > { %1065 = vmatpush.msrb.mxu2 %v1592_v9  ;;  %1088 = vmatpush.msrb.mxu3 %v1593_v10 }
  0x81   : > { %989 = vmatpush.msrb.mxu0 %v961_v49  ;;  %1012 = vmatpush.msrb.mxu1 %v962_v50 }
  0x82   : > { %1066 = vmatpush.msrb.mxu2 %v1590_v13  ;;  %1089 = vmatpush.msrb.mxu3 %v1591_v14 }
  0x83   : > { %990 = vmatpush.msrb.mxu0 %v959_v53  ;;  %1013 = vmatpush.msrb.mxu1 %v960_v54 }
  0x84   : > { %1067 = vmatpush.msrb.mxu2 %v1588_v19  ;;  %1090 = vmatpush.msrb.mxu3 %v1589_v20 }
  0x85   : > { %991 = vmatpush.msrb.mxu0 %v957_v59  ;;  %1014 = vmatpush.msrb.mxu1 %v958_v60 }
  0x86   : > { %1068 = vmatpush.msrb.mxu2 %v1586_v23  ;;  %1091 = vmatpush.msrb.mxu3 %v1587_v24 }
  0x87   : > { %992 = vmatpush.msrb.mxu0 %v955_v1  ;;  %1015 = vmatpush.msrb.mxu1 %v956_v2 }
  0x88   : > { %1069 = vmatpush.msrb.mxu2 %v1584_v57  ;;  %1092 = vmatpush.msrb.mxu3 %v1585_v5  ;;  %v1225_v57 = vld [vmem:[%s2749_s7 + $0xf8] sm:$0xff]  ;;  %v1207_v5 = vld [vmem:[%s2749_s7 + $0x68] sm:$0xff] }
  0x89   : > { %1138 = vmatpush.msra.mxu0 %v1618_v7  ;;  %1161 = vmatpush.msra.mxu1 %v1619_v8 }
  0x8a   : > { %1247 = vmatpush.msra.mxu3 %v1225_v57 }
  0x8b   : > { %1139 = vmatpush.msra.mxu0 %v1616_v11  ;;  %1162 = vmatpush.msra.mxu1 %v1617_v12 }
  0x8d   : > { %1140 = vmatpush.msra.mxu0 %v1614_v17  ;;  %1163 = vmatpush.msra.mxu1 %v1615_v18 }
  0x8f   : > { %1141 = vmatpush.msra.mxu0 %v1612_v21  ;;  %1164 = vmatpush.msra.mxu1 %v1613_v22 }
  0x91   : > { %1142 = vmatpush.msra.mxu0 %v1610_v58  ;;  %1165 = vmatpush.msra.mxu1 %v1611_v27  ;;  %v1208_v58 = vld [vmem:[%s2749_s7 + $0x70] sm:$0xff] }
  0x92   : > { %v1224_v27 = vld [vmem:[%s2749_s7 + $0xf0] sm:$0xff] }
  0x93   : > { %1143 = vmatpush.msra.mxu0 %v1608_v6  ;;  %1166 = vmatpush.msra.mxu1 %v1609_v28  ;;  %v1223_v6 = vld [vmem:[%s2749_s7 + $0xe8] sm:$0xff]  ;;  %v1206_v28 = vld [vmem:[%s2749_s7 + $0x60] sm:$0xff] }
  0x94   : > { %1248 = vmatpush.msra.mxu3 %v1224_v27 }
  0x95   : > { %1144 = vmatpush.msra.mxu0 %v1606_v31  ;;  %1167 = vmatpush.msra.mxu1 %v1607_v32  ;;  %v1222_v31 = vld [vmem:[%s2749_s7 + $0xe0] sm:$0xff]  ;;  %v1205_v32 = vld [vmem:[%s2749_s7 + $0x58] sm:$0xff] }
  0x96   : > { %1249 = vmatpush.msra.mxu3 %v1223_v6 }
  0x97   : > { %1145 = vmatpush.msra.mxu0 %v1604_v33  ;;  %1168 = vmatpush.msra.mxu1 %v1605_v34  ;;  %v1221_v33 = vld [vmem:[%s2749_s7 + $0xd8] sm:$0xff]  ;;  %v1204_v34 = vld [vmem:[%s2749_s7 + $0x50] sm:$0xff] }
  0x98   : > { %1250 = vmatpush.msra.mxu3 %v1222_v31 }
  0x9a   : > { %1251 = vmatpush.msra.mxu3 %v1221_v33  ;;  %v1272_v33 = vld [vmem:[%s2751_s9] sm:$0xf] }
  0x9b   : > { %1275 = vst [vmem:[#allocation1] ss:$4 sm:$0xff] %v1272_v33 }
  0xbf   : > { %v2417_v40 = vpop.f32.mrf.mxu3 }
  0xc0   : > { %v2415_v39 = vpop.f32.mrf.mxu2 }
  0xc1   : > { %v2411_v37 = vpop.f32.mrf.mxu0  ;;  %v2413_v38 = vpop.f32.mrf.mxu1  ;;  %v573_v42 = vadd.f32 %v2417_v40, %v2415_v39 }
  0xc2   : > { %v493_v30 = vadd.f32 %v2413_v38, %v2411_v37 }
  0xc3   : > { %v578_v48 = vadd.f32 %v1644_v41, %v573_v42  ;;  %v1201_v42 = vld [vmem:[%s2749_s7 + $0x38] sm:$0xff] }
  0xc4   : > { %v498_v47 = vadd.f32 %v1643_v29, %v493_v30  ;;  %v1202_v30 = vld [vmem:[%s2749_s7 + $0x40] sm:$0xff] }
  0xca   : > { %v2453_v51 = vpop.f32.mrf.mxu2  ;;  %v2455_v52 = vpop.f32.mrf.mxu3 }
  0xcb   : > { %v2437_v45 = vpop.f32.mrf.mxu0  ;;  %v2439_v46 = vpop.f32.mrf.mxu1  ;;  %v576_v37 = vadd.f32 %v2455_v52, %v2453_v51 }
  0xcc   : > { %v496_v55 = vadd.f32 %v2439_v46, %v2437_v45 }
  0xcd   : > { %v579_v61 = vadd.f32 %v1644_v41, %v576_v37  ;;  %v1218_v41 = vld [vmem:[%s2749_s7 + $0xc0] sm:$0xff] }
  0xce   : > { %v499_v2 = vadd.f32 %v1643_v29, %v496_v55  ;;  %v1219_v29 = vld [vmem:[%s2749_s7 + $0xc8] sm:$0xff]  ;;  %v1198_v37 = vld [vmem:[%s2749_s7 + $0x20] sm:$0xff]  ;;  %v1213_v55 = vld [vmem:[%s2749_s7 + $0x98] sm:$0xff] }
  0xd6   : > { %v730_v15 = vpop.f32.mrf.mxu2  ;;  %v753_v16 = vpop.f32.mrf.mxu3 }
  0xd7   : > { %v2481_v63 = vpop.f32.mrf.mxu0  ;;  %v2483_v0 = vpop.f32.mrf.mxu1  ;;  %v754_v50 = vadd.f32 %v753_v16, %v730_v15 }
  0xd8   : > { %v673_v49 = vadd.f32 %v2483_v0, %v2481_v63 }
  0xd9   : > { %v759_v40 = vadd.f32 %v754_v50, %v578_v48  ;;  %v1199_v50 = vld [vmem:[%s2749_s7 + $0x28] sm:$0xff] }
  0xda   : > { %v678_v39 = vadd.f32 %v673_v49, %v498_v47  ;;  %v1216_v47 = vld [vmem:[%s2749_s7 + $0xb0] sm:$0xff] }
  0xe0   : > { %v733_v35 = vpop.f32.mrf.mxu2  ;;  %v756_v36 = vpop.f32.mrf.mxu3 }
  0xe1   : > { %v652_v25 = vpop.f32.mrf.mxu0  ;;  %v675_v26 = vpop.f32.mrf.mxu1  ;;  %v757_v0 = vadd.f32 %v756_v36, %v733_v35  ;;  %v1220_v35 = vld [vmem:[%s2749_s7 + $0xd0] sm:$0xff]  ;;  %v1203_v36 = vld [vmem:[%s2749_s7 + $0x48] sm:$0xff] }
  0xe2   : > { %v676_v63 = vadd.f32 %v675_v26, %v652_v25  ;;  %v1209_v26 = vld [vmem:[%s2749_s7 + $0x78] sm:$0xff]  ;;  %1252 = vmatpush.msra.mxu3 %v1220_v35  ;;  %v1277_v35 = vld.sshfl [vmem:[#allocation1 + $0x8] sm:$0xff pattern:$0x73625140] }
  0xe3   : > { %v760_v9 = vadd.f32 %v757_v0, %v579_v61  ;;  %1227 = vmatpush.msra.mxu2 %v1209_v26 }
  0xe4   : > { %v679_v8 = vadd.f32 %v676_v63, %v499_v2  ;;  %1253 = vmatpush.msra.mxu3 %v1219_v29  ;;  %v949_v2 = vld [vmem:[%s2748_s6] sm:$0x3] }
  0xe5   : > { %1228 = vmatpush.msra.mxu2 %v1208_v58 }
  0xe6   : > { %1254 = vmatpush.msra.mxu3 %v1218_v41 }
  0xe7   : > { %1229 = vmatpush.msra.mxu2 %v1207_v5 }
  0xe9   : > { %1230 = vmatpush.msra.mxu2 %v1206_v28 }
  0xeb   : > { %1231 = vmatpush.msra.mxu2 %v1205_v32 }
  0xed   : > { %1232 = vmatpush.msra.mxu2 %v1204_v34  ;;  %v1276_v34 = vld.sshfl [vmem:[#allocation1] sm:$0xff pattern:$0x73625140] }
  0xef   : > { %1233 = vmatpush.msra.mxu2 %v1203_v36  ;;  %v1226_v36 = vld [vmem:[%s2750_s8] sm:$0x1] }
  0xf1   : > { %1234 = vmatpush.msra.mxu2 %v1202_v30 }
  0xf2   : > { %v826_v43 = vpop.f32.mrf.mxu0  ;;  %v849_v44 = vpop.f32.mrf.mxu1 }
  0xf3   : > { %v850_v53 = vadd.f32 %v849_v44, %v826_v43  ;;  %v1217_v43 = vld [vmem:[%s2749_s7 + $0xb8] sm:$0xff]  ;;  %1235 = vmatpush.msra.mxu2 %v1201_v42  ;;  %v1200_v44 = vld [vmem:[%s2749_s7 + $0x30] sm:$0xff] }
  0xf4   : > { %1255 = vmatpush.msra.mxu3 %v1217_v43 }
  0xf5   : > { %v855_v59 = vadd.f32 %v850_v53, %v678_v39  ;;  %1236 = vmatpush.msra.mxu2 %v1200_v44  ;;  %v1215_v53 = vld [vmem:[%s2749_s7 + $0xa8] sm:$0xff]  ;;  %v1196_v39 = vld [vmem:[%s2749_s7 + $0x10] sm:$0xff] }
  0xf6   : > { %1256 = vmatpush.msra.mxu3 %v1216_v47  ;;  %v1273_v47 = vld [vmem:[%s2752_s10] sm:$0x3] }
  0xf7   : > { %1237 = vmatpush.msra.mxu2 %v1199_v50 }
  0xf8   : > { %1257 = vmatpush.msra.mxu3 %v1215_v53 }
  0xf9   : > { %v907_v38 = vpop.f32.mrf.mxu2  ;;  %v930_v54 = vpop.f32.mrf.mxu3  ;;  %1238 = vmatpush.msra.mxu2 %v1198_v37 }
  0xfa   : > { %v931_v56 = vadd.f32 %v930_v54, %v907_v38  ;;  %v829_v62 = vpop.f32.mrf.mxu0  ;;  %v852_v1 = vpop.f32.mrf.mxu1  ;;  %v1214_v38 = vld [vmem:[%s2749_s7 + $0xa0] sm:$0xff]  ;;  %v1197_v54 = vld [vmem:[%s2749_s7 + $0x18] sm:$0xff] }
  0xfb   : > { %v853_v7 = vadd.f32 %v852_v1, %v829_v62  ;;  %1258 = vmatpush.msra.mxu3 %v1214_v38  ;;  %1239 = vmatpush.msra.mxu2 %v1197_v54  ;;  %v1194_v62 = vld [vmem:[%s2749_s7] sm:$0xff] }
  0xfc   : > { %v936_v60 = vadd.f32 %v931_v56, %v759_v40  ;;  %v1212_v40 = vld [vmem:[%s2749_s7 + $0x90] sm:$0xff]  ;;  %v1195_v56 = vld [vmem:[%s2749_s7 + $0x8] sm:$0xff]  ;;  %v1210_v1 = vld [vmem:[%s2749_s7 + $0x80] sm:$0xff] }
  0xfd   : > { %v856_v10 = vadd.f32 %v853_v7, %v679_v8  ;;  %1259 = vmatpush.msra.mxu3 %v1213_v55  ;;  %1240 = vmatpush.msra.mxu2 %v1196_v39  ;;  %v951_v7 = vperm.slane %v949_v2, 0 }
  0xfe   : > { %v938_v3 = vmul.f32 %v936_v60, %v855_v59  ;;  %v1211_v59 = vld [vmem:[%s2749_s7 + $0x88] sm:$0xff] }
  0xff   : > { %1260 = vmatpush.msra.mxu3 %v1212_v40  ;;  %1241 = vmatpush.msra.mxu2 %v1195_v56 }
 0x100   : > { %v942_v4 = vrot.slane %v938_v3, 7 }
 0x101   : > { %v910_v51 = vpop.f32.mrf.mxu2  ;;  %v933_v52 = vpop.f32.mrf.mxu3  ;;  %1261 = vmatpush.msra.mxu3 %v1211_v59  ;;  %1242 = vmatpush.msra.mxu2 %v1194_v62 }
 0x102   : > { %v934_v45 = vadd.f32 %v933_v52, %v910_v51  ;;  %v947_v46 = vsel %vm395_vm0, 0.0, %v942_v4  ;;  %v952_v51 = vperm.slane %v949_v2, 1 }
 0x103   : > { %1580 = vmatmul.msk.f32.vlgmr.msrb.gmra.mxu0 %vm971_vm4, %v947_v46  ;;  %1582 = vmatmul.msk.f32.vlgmr.msrb.gmra.mxu1 %vm971_vm4, %v947_v46  ;;  %v1045_v15 = vrot.slane %v947_v46, 1  ;;  %v1121_v20 = vrot.slane %v947_v46, 2 }
 0x104   : > { %v937_v11 = vadd.f32 %v934_v45, %v760_v9  ;;  %1262 = vmatpush.msra.mxu3 %v1210_v1  ;;  %1624 = vmatpush.msk.msrb.mxu0 %vm1287_vm5, %v1276_v34 }
 0x105   : > { %1626 = vmatpush.msk.msrb.mxu1 %vm1287_vm5, %v1277_v35 }
 0x106   : > { %v939_v12 = vmul.f32 %v937_v11, %v856_v10 }
 0x108   : > { %v943_v13 = vrot.slane %v939_v12, 7 }
 0x10a   : > { %v944_v14 = vsel %vm395_vm0, %v942_v4, %v943_v13  ;;  %v948_v18 = vsel %vm395_vm0, %v943_v13, 0.0 }
 0x10b   : > { %1581 = vmatmul.msk.f32.gmra.mxu0 %vm971_vm4, %v944_v14  ;;  %v1046_v16 = vrot.slane %v944_v14, 1  ;;  %1583 = vmatmul.msk.f32.gmra.mxu1 %vm971_vm4, %v944_v14  ;;  %v1122_v19 = vrot.slane %v944_v14, 2  ;;  %v1048_v21 = vrot.slane %v948_v18, 1  ;;  %v1124_v24 = vrot.slane %v948_v18, 2 }
 0x10d   : > { %v1047_v17 = vsel %vm617_vm2, %v1045_v15, %v1046_v16  ;;  %v1123_v22 = vsel %vm794_vm3, %v1121_v20, %v1122_v19  ;;  %v1049_v23 = vsel %vm617_vm2, %v1046_v16, %v1048_v21  ;;  %v1125_v25 = vsel %vm794_vm3, %v1122_v19, %v1124_v24 }
 0x10e   : > { %1600 = vmatmul.msk.f32.vlgmr.msrb.gmra.mxu2 %vm971_vm4, %v1047_v17  ;;  %1602 = vmatmul.msk.f32.vlgmr.msrb.gmra.mxu3 %vm971_vm4, %v1047_v17 }
 0x113   : > { %1620 = vmatmul.msk.f32.vlgmr.msra.gmra.mxu0 %vm971_vm4, %v1123_v22  ;;  %1622 = vmatmul.msk.f32.vlgmr.msra.gmra.mxu1 %vm971_vm4, %v1123_v22 }
 0x116   : > { %1601 = vmatmul.msk.f32.gmra.mxu2 %vm971_vm4, %v1049_v23  ;;  %1603 = vmatmul.msk.f32.gmra.mxu3 %vm971_vm4, %v1049_v23 }
 0x11b   : > { %1621 = vmatmul.msk.f32.gmra.mxu0 %vm971_vm4, %v1125_v25  ;;  %1623 = vmatmul.msk.f32.gmra.mxu1 %vm971_vm4, %v1125_v25 }
 0x180   : > { %v994_v48 = vpop.f32.mrf.mxu0  ;;  %v1017_v49 = vpop.f32.mrf.mxu1 }
 0x181   : > { %v1023_v52 = vadd.f32 %v994_v48, %v951_v7  ;;  %v1024_v8 = vadd.f32 %v1017_v49, %v952_v51  ;;  %v1279_v48 = vperm.slane %v1273_v47, 0  ;;  %v1280_v49 = vperm.slane %v1273_v47, 1 }
 0x188   : > { %v997_v60 = vpop.f32.mrf.mxu0  ;;  %v1020_v61 = vpop.f32.mrf.mxu1 }
 0x189   : > { %v1025_v9 = vadd.f32 %v997_v60, %v951_v7  ;;  %v1026_v45 = vadd.f32 %v1020_v61, %v952_v51 }
 0x190   : > { %v1147_v63 = vpop.f32.mrf.mxu0  ;;  %v1170_v0 = vpop.f32.mrf.mxu1 }
 0x191   : > { %v1071_v3 = vpop.f32.mrf.mxu2  ;;  %v1094_v4 = vpop.f32.mrf.mxu3 }
 0x192   : > { %v1100_v46 = vadd.f32 %v1071_v3, %v1023_v52  ;;  %v1101_v10 = vadd.f32 %v1094_v4, %v1024_v8 }
 0x194   : > { %v2709_v17 = vadd.f32 %v1147_v63, %v1100_v46  ;;  %v2711_v18 = vadd.f32 %v1170_v0, %v1101_v10 }
 0x198   : > { %v1150_v15 = vpop.f32.mrf.mxu0  ;;  %v1173_v16 = vpop.f32.mrf.mxu1 }
 0x199   : > { %v1074_v11 = vpop.f32.mrf.mxu2  ;;  %v1097_v12 = vpop.f32.mrf.mxu3 }
 0x19a   : > { %v1102_v13 = vadd.f32 %v1074_v11, %v1025_v9  ;;  %v1103_v14 = vadd.f32 %v1097_v12, %v1026_v45 }
 0x19c   : > { %v2713_v19 = vadd.f32 %v1150_v15, %v1102_v13  ;;  %v2715_v20 = vadd.f32 %v1173_v16, %v1103_v14 }
 0x19e   : > { %v1180_v21 = vadd.f32 %v2713_v19, %v2709_v17  ;;  %v1187_v22 = vadd.f32 %v2715_v20, %v2711_v18 }
 0x1a0   : > { %v1181_v23 = vrot.slane %v1180_v21, 4  ;;  %v1188_v24 = vrot.slane %v1187_v22, 4 }
 0x1a2   : > { %v1182_v25 = vadd.f32 %v1181_v23, %v1180_v21  ;;  %v1189_v26 = vadd.f32 %v1188_v24, %v1187_v22 }
 0x1a4   : > { %v1183_v57 = vrot.slane %v1182_v25, 2  ;;  %v1190_v58 = vrot.slane %v1189_v26, 2 }
 0x1a6   : > { %v1184_v27 = vadd.f32 %v1183_v57, %v1182_v25  ;;  %v1191_v5 = vadd.f32 %v1190_v58, %v1189_v26 }
 0x1a8   : > { %v1185_v6 = vrot.slane %v1184_v27, 1  ;;  %v1192_v28 = vrot.slane %v1191_v5, 1 }
 0x1aa   : > { %v1186_v31 = vadd.f32 %v1185_v6, %v1184_v27  ;;  %v1193_v32 = vadd.f32 %v1192_v28, %v1191_v5 }
 0x1ac   : > { %1243 = vmatmul.f32.vlgmr.msra.gmra.mxu2 %v1186_v31  ;;  %1263 = vmatmul.f32.vlgmr.msra.gmra.mxu3 %v1193_v32 }
 0x22f   : > { %v1244_v29 = vpop.f32.mrf.mxu2  ;;  %v1264_v41 = vpop.f32.mrf.mxu3 }
 0x230   : > { %v1245_v30 = vadd.f32 %v1244_v29, %v1226_v36 }
 0x232   : > { %v1265_v42 = vadd.f32 %v1264_v41, %v1245_v30 }
 0x234   : > { %1268 = vrot.lane.b32.xlu0 %v1265_v42, %s1661_s28 }
 0x2a6   : > { %v1269_v43 = vpop.permute.xlu0 %1268 }
 0x2a7   : > { %v1271_v44 = vmul.f32 %v1269_v43, %v1265_v42 }
 0x2a9   : > { %1625 = vmatmul.msk.f32.vlgmr.msrb.gmra.mxu0 %vm1283_vm6, %v1271_v44  ;;  %1627 = vmatmul.msk.f32.vlgmr.msrb.gmra.mxu1 %vm1283_vm6, %v1271_v44 }
 0x326   : > { %v1309_v50 = vpop.f32.mrf.mxu0  ;;  %v1329_v53 = vpop.f32.mrf.mxu1 }
 0x327   : > { %v1310_v37 = vadd.f32 %v1309_v50, %v1279_v48  ;;  %v1330_v38 = vadd.f32 %v1329_v53, %v1280_v49 }
 0x329   : > { %v1628_v54 = vmul.f32 -1.442695, %v1310_v37  ;;  %v1629_v55 = vmul.f32 -1.442695, %v1330_v38 }
 0x32b   : > { %1645 = vpow2.f32 %v1628_v54 }
 0x32c   : > { %1647 = vpow2.f32 %v1629_v55 }
 0x331   : > { %v1646_v39 = vpop.eup %1645 }
 0x332   : > { %v1648_v40 = vpop.eup %1647  ;;  %v1338_v56 = vadd.f32 1.0, %v1646_v39 }
 0x333   : > { %v1339_v59 = vadd.f32 1.0, %v1648_v40 }
 0x334   : > { %1649 = vrcp.f32 %v1338_v56  ;;  %v1351_v63 = vand.u32 2147483648, %v1338_v56  ;;  %v1349_v4 = vand.u32 2147483647, %v1338_v56  ;;  %vm1345_vm9 = vweird.f32 %v1338_v56 }
 0x335   : > { %1651 = vrcp.f32 %v1339_v59  ;;  %v1366_v7 = vand.u32 2147483648, %v1339_v59  ;;  %v1364_v52 = vand.u32 2147483647, %v1339_v59  ;;  %vm1360_vm11 = vweird.f32 %v1339_v59 }
 0x336   : > { %v1352_v9 = vor.u32 1.1754944e-38, %v1351_v63  ;;  %vm1350_vm12 = vcmp.eq.f32.partialorder %v1349_v4, 8.507059e+37 }
 0x337   : > { %v1367_v10 = vor.u32 1.1754944e-38, %v1366_v7  ;;  %vm1365_vm14 = vcmp.eq.f32.partialorder %v1364_v52, 8.507059e+37 }
 0x33a   : > { %v1650_v60 = vpop.eup %1649 }
 0x33b   : > { %v1652_v61 = vpop.eup %1651  ;;  %v1341_v62 = vmul.f32 %v1650_v60, %v1338_v56  ;;  %vm1346_vm7 = vweird.f32 %v1650_v60 }
 0x33c   : > { %v1356_v1 = vmul.f32 %v1652_v61, %v1339_v59  ;;  %vm1361_vm8 = vweird.f32 %v1652_v61  ;;  %vm1347_vm10 = vmor %vm1345_vm9, %vm1346_vm7 }
 0x33d   : > { %v1342_v2 = vsub.f32 1.0, %v1341_v62  ;;  %vm1362_vm13 = vmor %vm1360_vm11, %vm1361_vm8 }
 0x33e   : > { %v1357_v0 = vsub.f32 1.0, %v1356_v1 }
 0x33f   : > { %v1343_v3 = vmul.f32 %v1650_v60, %v1342_v2 }
 0x340   : > { %v1358_v51 = vmul.f32 %v1652_v61, %v1357_v0 }
 0x341   : > { %v1344_v8 = vadd.f32 %v1650_v60, %v1343_v3 }
 0x342   : > { %v1359_v45 = vadd.f32 %v1652_v61, %v1358_v51 }
 0x343   : > { %v1348_v46 = vsel %vm1347_vm10, %v1650_v60, %v1344_v8 }
 0x344   : > { %v1353_v11 = vsel %vm1350_vm12, %v1352_v9, %v1348_v46  ;;  %v1363_v12 = vsel %vm1362_vm13, %v1652_v61, %v1359_v45 }
 0x345   : > { %v1370_v13 = vperm.slane %v1353_v11, 0  ;;  %v1368_v14 = vsel %vm1365_vm14, %v1367_v10, %v1363_v12 }
 0x346   : > { %v1371_v15 = vperm.slane %v1368_v14, 0 }
 0x347   : > { %v1372_v16 = vmul.f32 %v1370_v13, %v2709_v17  ;;  %v1374_v21 = vmul.f32 %v1370_v13, %v2713_v19 }
 0x348   : > { %v1373_v22 = vmul.f32 %v1371_v15, %v2711_v18  ;;  %v1375_v23 = vmul.f32 %v1371_v15, %v2715_v20 }
 0x349   : > { %1376 = vst [vmem:[%s386_s13] sm:$0xff] %v1372_v16 }
 0x34a   : > { %1378 = vst [vmem:[%s386_s13 + $0x10] sm:$0xff] %v1374_v21 }
 0x34b   : > { %1377 = vst [vmem:[%s386_s13 + $0x8] sm:$0xff] %v1373_v22 }
 0x34c   : > { %1379 = vst [vmem:[%s386_s13 + $0x18] sm:$0xff] %v1375_v23 }
 0x34d PF: > { %s21_s17 = sadd.s32 1, %s1659_s17  }
 0x34e   : > { %p18_p4 = scmp.ge.s32.totalorder %s21_s17, 4  }
 0x350   :  { %20 = sbr.rel (!%p18_p4) target bundleno = 1 (0x1), region = 100 }

</bundles_post_ra>
